<compile_context>
chip_gen: v6e
topology: v6e:2x2x1
jax: 0.10.0
libtpu: 0.0.40
codegen_flags: <defaults>
</compile_context>

<pallas_src>
import functools

import jax
import jax.numpy as jnp
from jax import lax
from jax.experimental import pallas as pl
from jax.experimental.pallas import tpu as pltpu

LANE = 128


def _round_up(n, m):
    return ((n + m - 1) // m) * m


def _const_spec(shape):
    """BlockSpec for grid-invariant operands (weights/scales/mask).

    Requests single buffering (no need to double-buffer constants) when the
    running JAX supports `pipeline_mode`; otherwise falls back to defaults.
    """
    index_map = lambda n, j: (0,) * len(shape)
    if hasattr(pl, "Buffered"):
        try:
            return pl.BlockSpec(shape, index_map, pipeline_mode=pl.Buffered(1))
        except TypeError:
            pass
    return pl.BlockSpec(shape, index_map)


# -----------------------------------------------------------------------------
# Fused kernel: expand(1x1) -> depthwise(3x3) -> project(1x1) (+residual) for
# one (batch image, TH output rows) tile.  The expand_ratio-wide hidden
# activation lives only in VMEM scratch.
# -----------------------------------------------------------------------------
def _fused_kernel(*refs, stride, K, TH, Wp, Wo_p, th_in, expand, use_res):
    it = iter(refs)
    xp_ref = next(it)
    if expand:
        mask_ref = next(it)
        w_exp_ref = next(it)
        s_exp_ref = next(it)
        b_exp_ref = next(it)
    w_dw_ref = next(it)
    s_dw_ref = next(it)
    b_dw_ref = next(it)
    w_proj_ref = next(it)
    s_proj_ref = next(it)
    b_proj_ref = next(it)
    res_ref = next(it) if use_res else None
    o_ref = next(it)
    h_ref = next(it)
    hd_ref = next(it)

    j = pl.program_id(1)
    n_rows = th_in * Wp                                   # flattened halo rows
    # TH*stride*Wp is a multiple of 8 (Wp % 8 == 0): aligned big slices.
    base_in = pl.multiple_of(j * (TH * stride * Wp), 8)

    # ---- 1) 1x1 expand conv + BN + ReLU6 (hidden stays in VMEM) --------------
    x_rows = xp_ref[0, pl.ds(base_in, n_rows), :]         # (n_rows, cin_p) bf16
    if expand:
        h = jnp.dot(x_rows, w_exp_ref[...],
                    preferred_element_type=jnp.float32)
        h = jnp.clip(h * s_exp_ref[...] + b_exp_ref[...], 0.0, 6.0)
        # Zero spatial-padding positions: the reference pads the *hidden*
        # activation with zeros for the depthwise conv (relu6(b_exp) != 0).
        h = h * mask_ref[pl.ds(base_in, n_rows), :]
        h_ref[...] = h
    else:
        # No expansion: hidden == (already zero-padded) input.
        h_ref[...] = x_rows.astype(h_ref.dtype)

    # ---- 2) 3x3 depthwise conv + BN + ReLU6 ----------------------------------
    w_dw = w_dw_ref[...]                                   # (K*K, hid_p) f32
    s_dw = s_dw_ref[...]
    b_dw = b_dw_ref[...]
    hid_p = w_dw.shape[-1]
    # Hoist the 9 tap weights: broadcast once per tile, reused for every row.
    # (A pl.ds(tap, Wo_p, stride=0) broadcast-load would put this on the vld
    #  slot instead of the VPU on newer toolchains.)
    w_taps = [jnp.broadcast_to(w_dw[t:t + 1, :], (Wo_p, hid_p))
              for t in range(K * K)]

    for r in range(TH):                                    # static, unrolled
        acc = None
        for kh in range(K):
            base = (r * stride + kh) * Wp                  # multiple of 8
            for kw in range(K):
                if stride == 1:
                    patch = h_ref[base + kw:base + kw + Wo_p, :]
                else:
                    patch = h_ref[pl.ds(base + kw, Wo_p, stride), :]
                term = patch * w_taps[kh * K + kw]
                acc = term if acc is None else acc + term  # init from tap 0
        hd = jnp.clip(acc * s_dw + b_dw, 0.0, 6.0)
        hd_ref[r * Wo_p:(r + 1) * Wo_p, :] = hd.astype(hd_ref.dtype)

    # ---- 3) 1x1 project conv + BN (+ residual): one lane-dense store ---------
    y = jnp.dot(hd_ref[...], w_proj_ref[...],
                preferred_element_type=jnp.float32)
    y = y * s_proj_ref[...] + b_proj_ref[...]
    if use_res:
        y = y + res_ref[0, :, :]
    o_ref[0, :, :] = y.astype(o_ref.dtype)


# -----------------------------------------------------------------------------
# InvertedResidual forward (wrapper: layout plumbing + one pallas_call)
# -----------------------------------------------------------------------------
def inverted_residual(x_nchw, params, *, stride, expand_ratio, row_tile=None,
                      vmem_budget=40 * 1024 * 1024):
    assert stride in (1, 2)
    K = 3
    pad = (K - 1) // 2
    x = jnp.transpose(x_nchw, (0, 2, 3, 1)).astype(jnp.float32)   # NCHW -> NHWC
    N, H, W, Cin = x.shape
    hidden, oup = params["w_proj"].shape
    expand = expand_ratio != 1
    use_res = (stride == 1 and Cin == oup)

    cin_p = _round_up(Cin, LANE)
    hid_p = _round_up(hidden, LANE)
    out_p = _round_up(oup, LANE)

    Ho = (H + 2 * pad - K) // stride + 1
    Wo = (W + 2 * pad - K) // stride + 1
    Wo_p = _round_up(Wo, 8)                      # aligned depthwise/output pitch
    # Input row pitch: multiple of 8 AND wide enough that a width-Wo_p
    # depthwise patch never reads past the tile's last input row.
    Wp = _round_up(max(W + 2 * pad, (Wo_p - 1) * stride + K), 8)
    Hp = H + 2 * pad

    def vmem_bytes(th):
        th_in_ = (th - 1) * stride + K
        b = 2 * Hp * Wp * cin_p * 2                      # bf16 image block x2
        b += 2 * th * Wo_p * out_p * 4                   # f32 output block x2
        if use_res:
            b += 2 * th * Wo_p * out_p * 4               # f32 residual block x2
        b += th_in_ * Wp * hid_p * 4                     # hidden scratch (f32)
        b += th * Wo_p * hid_p * 2                       # post-dw scratch (bf16)
        b += cin_p * hid_p * 2 + hid_p * out_p * 2       # 1x1 weights (bf16)
        b += (K * K + 4) * hid_p * 4 + 2 * out_p * 4     # dw weight, scales/biases
        if expand:
            b += Hp * Wp * 4                             # interior mask
        return b

    if row_tile is None:
        TH = 1
        for cand in range(Ho, 0, -1):                    # biggest tile that fits
            if Ho % cand == 0 and vmem_bytes(cand) <= vmem_budget:
                TH = cand
                break
    else:
        assert Ho % row_tile == 0
        TH = row_tile
    th_in = (TH - 1) * stride + K

    # --- host-side layout: halo + alignment padding, channel lane padding -----
    xp = jnp.pad(x, ((0, 0), (pad, pad), (pad, Wp - W - pad), (0, cin_p - Cin)))
    xp = xp.astype(jnp.bfloat16).reshape(N, Hp * Wp, cin_p)

    def pad2(a, rows, cols):
        return jnp.pad(a, ((0, rows - a.shape[0]), (0, cols - a.shape[1])))

    w_dw = pad2(params["w_dw"].reshape(K * K, hidden), K * K, hid_p)
    s_dw = pad2(params["s_dw"], 1, hid_p)
    b_dw = pad2(params["b_dw"], 1, hid_p)
    w_proj = pad2(params["w_proj"], hid_p, out_p).astype(jnp.bfloat16)
    s_proj = pad2(params["s_proj"], 1, out_p)
    b_proj = pad2(params["b_proj"], 1, out_p)

    args = [xp]
    in_specs = [pl.BlockSpec((1, Hp * Wp, cin_p), lambda n, j: (n, 0, 0))]

    if expand:
        row = jnp.arange(Hp, dtype=jnp.int32)[:, None]
        col = jnp.arange(Wp, dtype=jnp.int32)[None, :]
        interior = ((row >= pad) & (row < pad + H) &
                    (col >= pad) & (col < pad + W))
        mask = interior.astype(jnp.float32).reshape(Hp * Wp, 1)
        w_exp = pad2(params["w_exp"], cin_p, hid_p).astype(jnp.bfloat16)
        s_exp = pad2(params["s_exp"], 1, hid_p)
        b_exp = pad2(params["b_exp"], 1, hid_p)
        args += [mask, w_exp, s_exp, b_exp]
        in_specs += [_const_spec((Hp * Wp, 1)),
                     _const_spec((cin_p, hid_p)),
                     _const_spec((1, hid_p)),
                     _const_spec((1, hid_p))]

    args += [w_dw, s_dw, b_dw, w_proj, s_proj, b_proj]
    in_specs += [_const_spec((K * K, hid_p)),
                 _const_spec((1, hid_p)),
                 _const_spec((1, hid_p)),
                 _const_spec((hid_p, out_p)),
                 _const_spec((1, out_p)),
                 _const_spec((1, out_p))]

    if use_res:
        res = jnp.pad(x, ((0, 0), (0, 0), (0, Wo_p - W), (0, out_p - Cin)))
        res = res.reshape(N, Ho * Wo_p, out_p)            # output-layout residual
        args += [res]
        in_specs += [pl.BlockSpec((1, TH * Wo_p, out_p), lambda n, j: (n, j, 0))]

    kernel = functools.partial(
        _fused_kernel, stride=stride, K=K, TH=TH, Wp=Wp, Wo_p=Wo_p,
        th_in=th_in, expand=expand, use_res=use_res)

    out = pl.pallas_call(
        kernel,
        out_shape=jax.ShapeDtypeStruct((N, Ho * Wo_p, out_p), jnp.float32),
        grid=(N, Ho // TH),
        in_specs=in_specs,
        out_specs=pl.BlockSpec((1, TH * Wo_p, out_p), lambda n, j: (n, j, 0)),
        scratch_shapes=[
            pltpu.VMEM((th_in * Wp, hid_p), jnp.float32),   # hidden activation
            pltpu.VMEM((TH * Wo_p, hid_p), jnp.bfloat16),   # post-depthwise (MXU lhs)
        ],
        compiler_params=pltpu.CompilerParams(
            dimension_semantics=("parallel", "parallel"),
            # fits v7x's 64 MiB/TC with headroom; raise on v5e/v6e (128 MiB)
            # together with vmem_budget for bigger row tiles.
            vmem_limit_bytes=48 * 1024 * 1024,
        ),
    )(*args)

    # NOTE: in a full network, keep the lane-padded NHWC layout (and bf16) as
    # the inter-block format instead of slicing/transposing every block.
    out = out.reshape(N, Ho, Wo_p, out_p)[:, :, :Wo, :oup]
    return jnp.transpose(out, (0, 3, 1, 2))                   # NHWC -> NCHW


# -----------------------------------------------------------------------------
# Deterministic parameter init (BatchNorm folded into per-channel scale/bias)
# -----------------------------------------------------------------------------
def _bn_fold(c, seed_off):
    idx = jnp.arange(c, dtype=jnp.float32)
    gamma = 1.0 + 0.1 * jnp.cos(idx + seed_off)
    beta = 0.05 * jnp.sin(idx + seed_off)
    mean = 0.02 * (idx - c / 2.0)
    var = 1.0 + 0.05 * idx
    scale = gamma * lax.rsqrt(var + 1e-5)
    bias = beta - mean * scale
    return scale.reshape(1, c), bias.reshape(1, c)


def init_params(key, inp, oup, expand_ratio):
    hidden = int(round(inp * expand_ratio))
    k0, k1, k2 = jax.random.split(key, 3)
    params = {}
    if expand_ratio != 1:
        params["w_exp"] = 0.3 * jax.random.normal(k0, (inp, hidden), jnp.float32)
        params["s_exp"], params["b_exp"] = _bn_fold(hidden, 0.0)
    params["w_dw"] = 0.3 * jax.random.normal(k1, (3, 3, hidden), jnp.float32)
    params["s_dw"], params["b_dw"] = _bn_fold(hidden, 1.0)
    params["w_proj"] = 0.3 * jax.random.normal(k2, (hidden, oup), jnp.float32)
    params["s_proj"], params["b_proj"] = _bn_fold(oup, 2.0)
    return params


# -----------------------------------------------------------------------------
# Pure-JAX f32 reference (lax.conv) for sanity checking
# -----------------------------------------------------------------------------
def reference(x_nchw, params, *, stride, expand_ratio):
    x = jnp.transpose(x_nchw, (0, 2, 3, 1))
    dn = ("NHWC", "HWIO", "NHWC")
    h = x
    if expand_ratio != 1:
        w = params["w_exp"][None, None]
        h = lax.conv_general_dilated(h, w, (1, 1), "VALID", dimension_numbers=dn)
        h = jnp.clip(h * params["s_exp"] + params["b_exp"], 0.0, 6.0)
    C = h.shape[-1]
    wdw = params["w_dw"].reshape(3, 3, 1, C)
    h = lax.conv_general_dilated(h, wdw, (stride, stride), ((1, 1), (1, 1)),
                                 dimension_numbers=dn, feature_group_count=C)
    h = jnp.clip(h * params["s_dw"] + params["b_dw"], 0.0, 6.0)
    wp = params["w_proj"][None, None]
    h = lax.conv_general_dilated(h, wp, (1, 1), "VALID", dimension_numbers=dn)
    h = h * params["s_proj"] + params["b_proj"]
    oup = params["w_proj"].shape[1]
    if stride == 1 and x.shape[-1] == oup:
        h = h + x
    return jnp.transpose(h, (0, 3, 1, 2))


if __name__ == "__main__":
    key = jax.random.PRNGKey(0)
    N, H, W = 2, 16, 16
    # (inp, oup, stride, expand_ratio, row_tile): residual + multi row-tile,
    # stride-2, and no-expansion paths are all exercised.
    configs = [
        (4, 4, 1, 6, 4),
        (4, 8, 2, 6, None),
        (8, 8, 1, 1, None),
    ]
    for inp, oup, stride, expand_ratio, row_tile in configs:
        key, kx, kp = jax.random.split(key, 3)
        x = jax.random.normal(kx, (N, inp, H, W), jnp.float32)
        params = init_params(kp, inp, oup, expand_ratio)

        out = inverted_residual(x, params, stride=stride,
                                expand_ratio=expand_ratio, row_tile=row_tile)
        out = jax.block_until_ready(out)

        ref = reference(x, params, stride=stride, expand_ratio=expand_ratio)
        assert out.shape == ref.shape, (out.shape, ref.shape)
        err = float(jnp.max(jnp.abs(out - ref)))
        # bf16 matmul operands + bf16 image (f32 accumulation everywhere):
        # small abs + relative tolerance.
        tol = 5e-2 + 2e-2 * float(jnp.max(jnp.abs(ref)))
        assert err < tol, (f"mismatch (inp={inp}, oup={oup}, stride={stride}, "
                           f"t={expand_ratio}): {err} >= {tol}")

    print("KERNEL_OK")
</pallas_src>

<mosaic_0001>
module attributes {stable_mosaic.version = 11 : i64} {
  func.func @_fused_kernel(%arg0: i32, %arg1: i32, %arg2: memref<1x432x128xbf16, #tpu.memory_space<vmem>>, %arg3: memref<432x1xf32, #tpu.memory_space<vmem>>, %arg4: memref<128x128xbf16, #tpu.memory_space<vmem>>, %arg5: memref<1x128xf32, #tpu.memory_space<vmem>>, %arg6: memref<1x128xf32, #tpu.memory_space<vmem>>, %arg7: memref<9x128xf32, #tpu.memory_space<vmem>>, %arg8: memref<1x128xf32, #tpu.memory_space<vmem>>, %arg9: memref<1x128xf32, #tpu.memory_space<vmem>>, %arg10: memref<128x128xbf16, #tpu.memory_space<vmem>>, %arg11: memref<1x128xf32, #tpu.memory_space<vmem>>, %arg12: memref<1x128xf32, #tpu.memory_space<vmem>>, %arg13: memref<1x64x128xf32, #tpu.memory_space<vmem>>, %arg14: memref<1x64x128xf32, #tpu.memory_space<vmem>>, %arg15: memref<144x128xf32, #tpu.memory_space<vmem>>, %arg16: memref<64x128xbf16, #tpu.memory_space<vmem>>) attributes {dimension_semantics = [#tpu.dimension_semantics<parallel>, #tpu.dimension_semantics<parallel>], iteration_bounds = array<i64: 2, 4>, scalar_prefetch = 0 : i64, scratch_operands = 2 : i64, tpu.core_type = #tpu.core_type<tc>, window_params = [{transform_indices = @transform_0, window_bounds = array<i64: 1, 432, 128>}, {pipeline_mode = #tpu.pipeline_mode<synchronous>, transform_indices = @transform_1, window_bounds = array<i64: 432, 1>}, {pipeline_mode = #tpu.pipeline_mode<synchronous>, transform_indices = @transform_2, window_bounds = array<i64: 128, 128>}, {pipeline_mode = #tpu.pipeline_mode<synchronous>, transform_indices = @transform_3, window_bounds = array<i64: 1, 128>}, {pipeline_mode = #tpu.pipeline_mode<synchronous>, transform_indices = @transform_4, window_bounds = array<i64: 1, 128>}, {pipeline_mode = #tpu.pipeline_mode<synchronous>, transform_indices = @transform_5, window_bounds = array<i64: 9, 128>}, {pipeline_mode = #tpu.pipeline_mode<synchronous>, transform_indices = @transform_6, window_bounds = array<i64: 1, 128>}, {pipeline_mode = #tpu.pipeline_mode<synchronous>, transform_indices = @transform_7, window_bounds = array<i64: 1, 128>}, {pipeline_mode = #tpu.pipeline_mode<synchronous>, transform_indices = @transform_8, window_bounds = array<i64: 128, 128>}, {pipeline_mode = #tpu.pipeline_mode<synchronous>, transform_indices = @transform_9, window_bounds = array<i64: 1, 128>}, {pipeline_mode = #tpu.pipeline_mode<synchronous>, transform_indices = @transform_10, window_bounds = array<i64: 1, 128>}, {transform_indices = @transform_11, window_bounds = array<i64: 1, 64, 128>}, {transform_indices = @transform_12, window_bounds = array<i64: 1, 64, 128>}]} {
    %c96_i32 = arith.constant 96 : i32
    %0 = arith.muli %arg1, %c96_i32 : i32
    %1 = tpu.assume_multiple %0, 8 : i32
    %c0 = arith.constant 0 : index
    %2 = arith.index_cast %1 : i32 to index
    %c0_0 = arith.constant 0 : index
    %3 = vector.load %arg2[%c0, %2, %c0_0] : memref<1x432x128xbf16, #tpu.memory_space<vmem>>, vector<1x144x128xbf16>
    %4 = vector.shape_cast %3 : vector<1x144x128xbf16> to vector<144x128xbf16>
    %c0_1 = arith.constant 0 : index
    %c0_2 = arith.constant 0 : index
    %5 = vector.load %arg4[%c0_1, %c0_2] : memref<128x128xbf16, #tpu.memory_space<vmem>>, vector<128x128xbf16>
    %cst = arith.constant dense<0.000000e+00> : vector<144x128xf32>
    %6 = tpu.matmul %4, %5, %cst {dimension_numbers = #tpu.dot_dimension_numbers<[1], [0], [0], [1], [0, 0, 1, 1], [], []>} : vector<144x128xbf16>, vector<128x128xbf16>, vector<144x128xf32> -> vector<144x128xf32>
    %c0_3 = arith.constant 0 : index
    %c0_4 = arith.constant 0 : index
    %7 = vector.load %arg5[%c0_3, %c0_4] : memref<1x128xf32, #tpu.memory_space<vmem>>, vector<1x128xf32>
    %8 = vector.broadcast %7 : vector<1x128xf32> to vector<144x128xf32>
    %9 = arith.mulf %6, %8 : vector<144x128xf32>
    %c0_5 = arith.constant 0 : index
    %c0_6 = arith.constant 0 : index
    %10 = vector.load %arg6[%c0_5, %c0_6] : memref<1x128xf32, #tpu.memory_space<vmem>>, vector<1x128xf32>
    %11 = vector.broadcast %10 : vector<1x128xf32> to vector<144x128xf32>
    %12 = arith.addf %9, %11 : vector<144x128xf32>
    %cst_7 = arith.constant 0.000000e+00 : f32
    %cst_8 = arith.constant 6.000000e+00 : f32
    %13 = vector.broadcast %cst_7 : f32 to vector<144x128xf32>
    %14 = arith.maximumf %13, %12 : vector<144x128xf32>
    %15 = vector.broadcast %cst_8 : f32 to vector<144x128xf32>
    %16 = arith.minimumf %15, %14 : vector<144x128xf32>
    %17 = arith.index_cast %1 : i32 to index
    %c0_9 = arith.constant 0 : index
    %18 = vector.load %arg3[%17, %c0_9] : memref<432x1xf32, #tpu.memory_space<vmem>>, vector<144x1xf32>
    %19 = vector.broadcast %18 : vector<144x1xf32> to vector<144x128xf32>
    %20 = arith.mulf %16, %19 : vector<144x128xf32>
    %c0_10 = arith.constant 0 : index
    %c0_11 = arith.constant 0 : index
    %21 = vector.load %arg15[%c0_10, %c0_11] : memref<144x128xf32, #tpu.memory_space<vmem>>, vector<144x128xf32>
    tpu.vector_store %arg15[%c0_10, %c0_11], %20 {strides = array<i32>} : memref<144x128xf32, #tpu.memory_space<vmem>>, vector<144x128xf32>,
    %c0_12 = arith.constant 0 : index
    %c0_13 = arith.constant 0 : index
    %22 = vector.load %arg7[%c0_12, %c0_13] : memref<9x128xf32, #tpu.memory_space<vmem>>, vector<9x128xf32>
    %c0_14 = arith.constant 0 : index
    %c0_15 = arith.constant 0 : index
    %23 = vector.load %arg8[%c0_14, %c0_15] : memref<1x128xf32, #tpu.memory_space<vmem>>, vector<1x128xf32>
    %c0_16 = arith.constant 0 : index
    %c0_17 = arith.constant 0 : index
    %24 = vector.load %arg9[%c0_16, %c0_17] : memref<1x128xf32, #tpu.memory_space<vmem>>, vector<1x128xf32>
    %25 = vector.extract_strided_slice %22 {offsets = [0, 0], sizes = [1, 128], strides = [1, 1]} : vector<9x128xf32> to vector<1x128xf32>
    %26 = vector.shape_cast %25 : vector<1x128xf32> to vector<1x128xf32>
    %27 = vector.broadcast %26 : vector<1x128xf32> to vector<16x128xf32>
    %28 = vector.extract_strided_slice %22 {offsets = [1, 0], sizes = [1, 128], strides = [1, 1]} : vector<9x128xf32> to vector<1x128xf32>
    %29 = vector.shape_cast %28 : vector<1x128xf32> to vector<1x128xf32>
    %30 = vector.broadcast %29 : vector<1x128xf32> to vector<16x128xf32>
    %31 = vector.extract_strided_slice %22 {offsets = [2, 0], sizes = [1, 128], strides = [1, 1]} : vector<9x128xf32> to vector<1x128xf32>
    %32 = vector.shape_cast %31 : vector<1x128xf32> to vector<1x128xf32>
    %33 = vector.broadcast %32 : vector<1x128xf32> to vector<16x128xf32>
    %34 = vector.extract_strided_slice %22 {offsets = [3, 0], sizes = [1, 128], strides = [1, 1]} : vector<9x128xf32> to vector<1x128xf32>
    %35 = vector.shape_cast %34 : vector<1x128xf32> to vector<1x128xf32>
    %36 = vector.broadcast %35 : vector<1x128xf32> to vector<16x128xf32>
    %37 = vector.extract_strided_slice %22 {offsets = [4, 0], sizes = [1, 128], strides = [1, 1]} : vector<9x128xf32> to vector<1x128xf32>
    %38 = vector.shape_cast %37 : vector<1x128xf32> to vector<1x128xf32>
    %39 = vector.broadcast %38 : vector<1x128xf32> to vector<16x128xf32>
    %40 = vector.extract_strided_slice %22 {offsets = [5, 0], sizes = [1, 128], strides = [1, 1]} : vector<9x128xf32> to vector<1x128xf32>
    %41 = vector.shape_cast %40 : vector<1x128xf32> to vector<1x128xf32>
    %42 = vector.broadcast %41 : vector<1x128xf32> to vector<16x128xf32>
    %43 = vector.extract_strided_slice %22 {offsets = [6, 0], sizes = [1, 128], strides = [1, 1]} : vector<9x128xf32> to vector<1x128xf32>
    %44 = vector.shape_cast %43 : vector<1x128xf32> to vector<1x128xf32>
    %45 = vector.broadcast %44 : vector<1x128xf32> to vector<16x128xf32>
    %46 = vector.extract_strided_slice %22 {offsets = [7, 0], sizes = [1, 128], strides = [1, 1]} : vector<9x128xf32> to vector<1x128xf32>
    %47 = vector.shape_cast %46 : vector<1x128xf32> to vector<1x128xf32>
    %48 = vector.broadcast %47 : vector<1x128xf32> to vector<16x128xf32>
    %49 = vector.extract_strided_slice %22 {offsets = [8, 0], sizes = [1, 128], strides = [1, 1]} : vector<9x128xf32> to vector<1x128xf32>
    %50 = vector.shape_cast %49 : vector<1x128xf32> to vector<1x128xf32>
    %51 = vector.broadcast %50 : vector<1x128xf32> to vector<16x128xf32>
    %c0_18 = arith.constant 0 : index
    %c0_19 = arith.constant 0 : index
    %52 = vector.load %arg15[%c0_18, %c0_19] : memref<144x128xf32, #tpu.memory_space<vmem>>, vector<16x128xf32>
    %53 = arith.mulf %52, %27 : vector<16x128xf32>
    %c1 = arith.constant 1 : index
    %c0_20 = arith.constant 0 : index
    %54 = vector.load %arg15[%c1, %c0_20] : memref<144x128xf32, #tpu.memory_space<vmem>>, vector<16x128xf32>
    %55 = arith.mulf %54, %30 : vector<16x128xf32>
    %56 = arith.addf %53, %55 : vector<16x128xf32>
    %c2 = arith.constant 2 : index
    %c0_21 = arith.constant 0 : index
    %57 = vector.load %arg15[%c2, %c0_21] : memref<144x128xf32, #tpu.memory_space<vmem>>, vector<16x128xf32>
    %58 = arith.mulf %57, %33 : vector<16x128xf32>
    %59 = arith.addf %56, %58 : vector<16x128xf32>
    %c24 = arith.constant 24 : index
    %c0_22 = arith.constant 0 : index
    %60 = vector.load %arg15[%c24, %c0_22] : memref<144x128xf32, #tpu.memory_space<vmem>>, vector<16x128xf32>
    %61 = arith.mulf %60, %36 : vector<16x128xf32>
    %62 = arith.addf %59, %61 : vector<16x128xf32>
    %c25 = arith.constant 25 : index
    %c0_23 = arith.constant 0 : index
    %63 = vector.load %arg15[%c25, %c0_23] : memref<144x128xf32, #tpu.memory_space<vmem>>, vector<16x128xf32>
    %64 = arith.mulf %63, %39 : vector<16x128xf32>
    %65 = arith.addf %62, %64 : vector<16x128xf32>
    %c26 = arith.constant 26 : index
    %c0_24 = arith.constant 0 : index
    %66 = vector.load %arg15[%c26, %c0_24] : memref<144x128xf32, #tpu.memory_space<vmem>>, vector<16x128xf32>
    %67 = arith.mulf %66, %42 : vector<16x128xf32>
    %68 = arith.addf %65, %67 : vector<16x128xf32>
    %c48 = arith.constant 48 : index
    %c0_25 = arith.constant 0 : index
    %69 = vector.load %arg15[%c48, %c0_25] : memref<144x128xf32, #tpu.memory_space<vmem>>, vector<16x128xf32>
    %70 = arith.mulf %69, %45 : vector<16x128xf32>
    %71 = arith.addf %68, %70 : vector<16x128xf32>
    %c49 = arith.constant 49 : index
    %c0_26 = arith.constant 0 : index
    %72 = vector.load %arg15[%c49, %c0_26] : memref<144x128xf32, #tpu.memory_space<vmem>>, vector<16x128xf32>
    %73 = arith.mulf %72, %48 : vector<16x128xf32>
    %74 = arith.addf %71, %73 : vector<16x128xf32>
    %c50 = arith.constant 50 : index
    %c0_27 = arith.constant 0 : index
    %75 = vector.load %arg15[%c50, %c0_27] : memref<144x128xf32, #tpu.memory_space<vmem>>, vector<16x128xf32>
    %76 = arith.mulf %75, %51 : vector<16x128xf32>
    %77 = arith.addf %74, %76 : vector<16x128xf32>
    %78 = vector.broadcast %23 : vector<1x128xf32> to vector<16x128xf32>
    %79 = arith.mulf %77, %78 : vector<16x128xf32>
    %80 = vector.broadcast %24 : vector<1x128xf32> to vector<16x128xf32>
    %81 = arith.addf %79, %80 : vector<16x128xf32>
    %cst_28 = arith.constant 0.000000e+00 : f32
    %cst_29 = arith.constant 6.000000e+00 : f32
    %82 = vector.broadcast %cst_28 : f32 to vector<16x128xf32>
    %83 = arith.maximumf %82, %81 : vector<16x128xf32>
    %84 = vector.broadcast %cst_29 : f32 to vector<16x128xf32>
    %85 = arith.minimumf %84, %83 : vector<16x128xf32>
    %86 = arith.truncf %85 : vector<16x128xf32> to vector<16x128xbf16>
    %c0_30 = arith.constant 0 : index
    %c0_31 = arith.constant 0 : index
    %87 = vector.load %arg16[%c0_30, %c0_31] : memref<64x128xbf16, #tpu.memory_space<vmem>>, vector<16x128xbf16>
    tpu.vector_store %arg16[%c0_30, %c0_31], %86 {strides = array<i32>} : memref<64x128xbf16, #tpu.memory_space<vmem>>, vector<16x128xbf16>,
    %c24_32 = arith.constant 24 : index
    %c0_33 = arith.constant 0 : index
    %88 = vector.load %arg15[%c24_32, %c0_33] : memref<144x128xf32, #tpu.memory_space<vmem>>, vector<16x128xf32>
    %89 = arith.mulf %88, %27 : vector<16x128xf32>
    %c25_34 = arith.constant 25 : index
    %c0_35 = arith.constant 0 : index
    %90 = vector.load %arg15[%c25_34, %c0_35] : memref<144x128xf32, #tpu.memory_space<vmem>>, vector<16x128xf32>
    %91 = arith.mulf %90, %30 : vector<16x128xf32>
    %92 = arith.addf %89, %91 : vector<16x128xf32>
    %c26_36 = arith.constant 26 : index
    %c0_37 = arith.constant 0 : index
    %93 = vector.load %arg15[%c26_36, %c0_37] : memref<144x128xf32, #tpu.memory_space<vmem>>, vector<16x128xf32>
    %94 = arith.mulf %93, %33 : vector<16x128xf32>
    %95 = arith.addf %92, %94 : vector<16x128xf32>
    %c48_38 = arith.constant 48 : index
    %c0_39 = arith.constant 0 : index
    %96 = vector.load %arg15[%c48_38, %c0_39] : memref<144x128xf32, #tpu.memory_space<vmem>>, vector<16x128xf32>
    %97 = arith.mulf %96, %36 : vector<16x128xf32>
    %98 = arith.addf %95, %97 : vector<16x128xf32>
    %c49_40 = arith.constant 49 : index
    %c0_41 = arith.constant 0 : index
    %99 = vector.load %arg15[%c49_40, %c0_41] : memref<144x128xf32, #tpu.memory_space<vmem>>, vector<16x128xf32>
    %100 = arith.mulf %99, %39 : vector<16x128xf32>
    %101 = arith.addf %98, %100 : vector<16x128xf32>
    %c50_42 = arith.constant 50 : index
    %c0_43 = arith.constant 0 : index
    %102 = vector.load %arg15[%c50_42, %c0_43] : memref<144x128xf32, #tpu.memory_space<vmem>>, vector<16x128xf32>
    %103 = arith.mulf %102, %42 : vector<16x128xf32>
    %104 = arith.addf %101, %103 : vector<16x128xf32>
    %c72 = arith.constant 72 : index
    %c0_44 = arith.constant 0 : index
    %105 = vector.load %arg15[%c72, %c0_44] : memref<144x128xf32, #tpu.memory_space<vmem>>, vector<16x128xf32>
    %106 = arith.mulf %105, %45 : vector<16x128xf32>
    %107 = arith.addf %104, %106 : vector<16x128xf32>
    %c73 = arith.constant 73 : index
    %c0_45 = arith.constant 0 : index
    %108 = vector.load %arg15[%c73, %c0_45] : memref<144x128xf32, #tpu.memory_space<vmem>>, vector<16x128xf32>
    %109 = arith.mulf %108, %48 : vector<16x128xf32>
    %110 = arith.addf %107, %109 : vector<16x128xf32>
    %c74 = arith.constant 74 : index
    %c0_46 = arith.constant 0 : index
    %111 = vector.load %arg15[%c74, %c0_46] : memref<144x128xf32, #tpu.memory_space<vmem>>, vector<16x128xf32>
    %112 = arith.mulf %111, %51 : vector<16x128xf32>
    %113 = arith.addf %110, %112 : vector<16x128xf32>
    %114 = vector.broadcast %23 : vector<1x128xf32> to vector<16x128xf32>
    %115 = arith.mulf %113, %114 : vector<16x128xf32>
    %116 = vector.broadcast %24 : vector<1x128xf32> to vector<16x128xf32>
    %117 = arith.addf %115, %116 : vector<16x128xf32>
    %cst_47 = arith.constant 0.000000e+00 : f32
    %cst_48 = arith.constant 6.000000e+00 : f32
    %118 = vector.broadcast %cst_47 : f32 to vector<16x128xf32>
    %119 = arith.maximumf %118, %117 : vector<16x128xf32>
    %120 = vector.broadcast %cst_48 : f32 to vector<16x128xf32>
    %121 = arith.minimumf %120, %119 : vector<16x128xf32>
    %122 = arith.truncf %121 : vector<16x128xf32> to vector<16x128xbf16>
    %c16 = arith.constant 16 : index
    %c0_49 = arith.constant 0 : index
    %123 = vector.load %arg16[%c16, %c0_49] : memref<64x128xbf16, #tpu.memory_space<vmem>>, vector<16x128xbf16>
    tpu.vector_store %arg16[%c16, %c0_49], %122 {strides = array<i32>} : memref<64x128xbf16, #tpu.memory_space<vmem>>, vector<16x128xbf16>,
    %c48_50 = arith.constant 48 : index
    %c0_51 = arith.constant 0 : index
    %124 = vector.load %arg15[%c48_50, %c0_51] : memref<144x128xf32, #tpu.memory_space<vmem>>, vector<16x128xf32>
    %125 = arith.mulf %124, %27 : vector<16x128xf32>
    %c49_52 = arith.constant 49 : index
    %c0_53 = arith.constant 0 : index
    %126 = vector.load %arg15[%c49_52, %c0_53] : memref<144x128xf32, #tpu.memory_space<vmem>>, vector<16x128xf32>
    %127 = arith.mulf %126, %30 : vector<16x128xf32>
    %128 = arith.addf %125, %127 : vector<16x128xf32>
    %c50_54 = arith.constant 50 : index
    %c0_55 = arith.constant 0 : index
    %129 = vector.load %arg15[%c50_54, %c0_55] : memref<144x128xf32, #tpu.memory_space<vmem>>, vector<16x128xf32>
    %130 = arith.mulf %129, %33 : vector<16x128xf32>
    %131 = arith.addf %128, %130 : vector<16x128xf32>
    %c72_56 = arith.constant 72 : index
    %c0_57 = arith.constant 0 : index
    %132 = vector.load %arg15[%c72_56, %c0_57] : memref<144x128xf32, #tpu.memory_space<vmem>>, vector<16x128xf32>
    %133 = arith.mulf %132, %36 : vector<16x128xf32>
    %134 = arith.addf %131, %133 : vector<16x128xf32>
    %c73_58 = arith.constant 73 : index
    %c0_59 = arith.constant 0 : index
    %135 = vector.load %arg15[%c73_58, %c0_59] : memref<144x128xf32, #tpu.memory_space<vmem>>, vector<16x128xf32>
    %136 = arith.mulf %135, %39 : vector<16x128xf32>
    %137 = arith.addf %134, %136 : vector<16x128xf32>
    %c74_60 = arith.constant 74 : index
    %c0_61 = arith.constant 0 : index
    %138 = vector.load %arg15[%c74_60, %c0_61] : memref<144x128xf32, #tpu.memory_space<vmem>>, vector<16x128xf32>
    %139 = arith.mulf %138, %42 : vector<16x128xf32>
    %140 = arith.addf %137, %139 : vector<16x128xf32>
    %c96 = arith.constant 96 : index
    %c0_62 = arith.constant 0 : index
    %141 = vector.load %arg15[%c96, %c0_62] : memref<144x128xf32, #tpu.memory_space<vmem>>, vector<16x128xf32>
    %142 = arith.mulf %141, %45 : vector<16x128xf32>
    %143 = arith.addf %140, %142 : vector<16x128xf32>
    %c97 = arith.constant 97 : index
    %c0_63 = arith.constant 0 : index
    %144 = vector.load %arg15[%c97, %c0_63] : memref<144x128xf32, #tpu.memory_space<vmem>>, vector<16x128xf32>
    %145 = arith.mulf %144, %48 : vector<16x128xf32>
    %146 = arith.addf %143, %145 : vector<16x128xf32>
    %c98 = arith.constant 98 : index
    %c0_64 = arith.constant 0 : index
    %147 = vector.load %arg15[%c98, %c0_64] : memref<144x128xf32, #tpu.memory_space<vmem>>, vector<16x128xf32>
    %148 = arith.mulf %147, %51 : vector<16x128xf32>
    %149 = arith.addf %146, %148 : vector<16x128xf32>
    %150 = vector.broadcast %23 : vector<1x128xf32> to vector<16x128xf32>
    %151 = arith.mulf %149, %150 : vector<16x128xf32>
    %152 = vector.broadcast %24 : vector<1x128xf32> to vector<16x128xf32>
    %153 = arith.addf %151, %152 : vector<16x128xf32>
    %cst_65 = arith.constant 0.000000e+00 : f32
    %cst_66 = arith.constant 6.000000e+00 : f32
    %154 = vector.broadcast %cst_65 : f32 to vector<16x128xf32>
    %155 = arith.maximumf %154, %153 : vector<16x128xf32>
    %156 = vector.broadcast %cst_66 : f32 to vector<16x128xf32>
    %157 = arith.minimumf %156, %155 : vector<16x128xf32>
    %158 = arith.truncf %157 : vector<16x128xf32> to vector<16x128xbf16>
    %c32 = arith.constant 32 : index
    %c0_67 = arith.constant 0 : index
    %159 = vector.load %arg16[%c32, %c0_67] : memref<64x128xbf16, #tpu.memory_space<vmem>>, vector<16x128xbf16>
    tpu.vector_store %arg16[%c32, %c0_67], %158 {strides = array<i32>} : memref<64x128xbf16, #tpu.memory_space<vmem>>, vector<16x128xbf16>,
    %c72_68 = arith.constant 72 : index
    %c0_69 = arith.constant 0 : index
    %160 = vector.load %arg15[%c72_68, %c0_69] : memref<144x128xf32, #tpu.memory_space<vmem>>, vector<16x128xf32>
    %161 = arith.mulf %160, %27 : vector<16x128xf32>
    %c73_70 = arith.constant 73 : index
    %c0_71 = arith.constant 0 : index
    %162 = vector.load %arg15[%c73_70, %c0_71] : memref<144x128xf32, #tpu.memory_space<vmem>>, vector<16x128xf32>
    %163 = arith.mulf %162, %30 : vector<16x128xf32>
    %164 = arith.addf %161, %163 : vector<16x128xf32>
    %c74_72 = arith.constant 74 : index
    %c0_73 = arith.constant 0 : index
    %165 = vector.load %arg15[%c74_72, %c0_73] : memref<144x128xf32, #tpu.memory_space<vmem>>, vector<16x128xf32>
    %166 = arith.mulf %165, %33 : vector<16x128xf32>
    %167 = arith.addf %164, %166 : vector<16x128xf32>
    %c96_74 = arith.constant 96 : index
    %c0_75 = arith.constant 0 : index
    %168 = vector.load %arg15[%c96_74, %c0_75] : memref<144x128xf32, #tpu.memory_space<vmem>>, vector<16x128xf32>
    %169 = arith.mulf %168, %36 : vector<16x128xf32>
    %170 = arith.addf %167, %169 : vector<16x128xf32>
    %c97_76 = arith.constant 97 : index
    %c0_77 = arith.constant 0 : index
    %171 = vector.load %arg15[%c97_76, %c0_77] : memref<144x128xf32, #tpu.memory_space<vmem>>, vector<16x128xf32>
    %172 = arith.mulf %171, %39 : vector<16x128xf32>
    %173 = arith.addf %170, %172 : vector<16x128xf32>
    %c98_78 = arith.constant 98 : index
    %c0_79 = arith.constant 0 : index
    %174 = vector.load %arg15[%c98_78, %c0_79] : memref<144x128xf32, #tpu.memory_space<vmem>>, vector<16x128xf32>
    %175 = arith.mulf %174, %42 : vector<16x128xf32>
    %176 = arith.addf %173, %175 : vector<16x128xf32>
    %c120 = arith.constant 120 : index
    %c0_80 = arith.constant 0 : index
    %177 = vector.load %arg15[%c120, %c0_80] : memref<144x128xf32, #tpu.memory_space<vmem>>, vector<16x128xf32>
    %178 = arith.mulf %177, %45 : vector<16x128xf32>
    %179 = arith.addf %176, %178 : vector<16x128xf32>
    %c121 = arith.constant 121 : index
    %c0_81 = arith.constant 0 : index
    %180 = vector.load %arg15[%c121, %c0_81] : memref<144x128xf32, #tpu.memory_space<vmem>>, vector<16x128xf32>
    %181 = arith.mulf %180, %48 : vector<16x128xf32>
    %182 = arith.addf %179, %181 : vector<16x128xf32>
    %c122 = arith.constant 122 : index
    %c0_82 = arith.constant 0 : index
    %183 = vector.load %arg15[%c122, %c0_82] : memref<144x128xf32, #tpu.memory_space<vmem>>, vector<16x128xf32>
    %184 = arith.mulf %183, %51 : vector<16x128xf32>
    %185 = arith.addf %182, %184 : vector<16x128xf32>
    %186 = vector.broadcast %23 : vector<1x128xf32> to vector<16x128xf32>
    %187 = arith.mulf %185, %186 : vector<16x128xf32>
    %188 = vector.broadcast %24 : vector<1x128xf32> to vector<16x128xf32>
    %189 = arith.addf %187, %188 : vector<16x128xf32>
    %cst_83 = arith.constant 0.000000e+00 : f32
    %cst_84 = arith.constant 6.000000e+00 : f32
    %190 = vector.broadcast %cst_83 : f32 to vector<16x128xf32>
    %191 = arith.maximumf %190, %189 : vector<16x128xf32>
    %192 = vector.broadcast %cst_84 : f32 to vector<16x128xf32>
    %193 = arith.minimumf %192, %191 : vector<16x128xf32>
    %194 = arith.truncf %193 : vector<16x128xf32> to vector<16x128xbf16>
    %c48_85 = arith.constant 48 : index
    %c0_86 = arith.constant 0 : index
    %195 = vector.load %arg16[%c48_85, %c0_86] : memref<64x128xbf16, #tpu.memory_space<vmem>>, vector<16x128xbf16>
    tpu.vector_store %arg16[%c48_85, %c0_86], %194 {strides = array<i32>} : memref<64x128xbf16, #tpu.memory_space<vmem>>, vector<16x128xbf16>,
    %c0_87 = arith.constant 0 : index
    %c0_88 = arith.constant 0 : index
    %196 = vector.load %arg16[%c0_87, %c0_88] : memref<64x128xbf16, #tpu.memory_space<vmem>>, vector<64x128xbf16>
    %c0_89 = arith.constant 0 : index
    %c0_90 = arith.constant 0 : index
    %197 = vector.load %arg10[%c0_89, %c0_90] : memref<128x128xbf16, #tpu.memory_space<vmem>>, vector<128x128xbf16>
    %cst_91 = arith.constant dense<0.000000e+00> : vector<64x128xf32>
    %198 = tpu.matmul %196, %197, %cst_91 {dimension_numbers = #tpu.dot_dimension_numbers<[1], [0], [0], [1], [0, 0, 1, 1], [], []>} : vector<64x128xbf16>, vector<128x128xbf16>, vector<64x128xf32> -> vector<64x128xf32>
    %c0_92 = arith.constant 0 : index
    %c0_93 = arith.constant 0 : index
    %199 = vector.load %arg11[%c0_92, %c0_93] : memref<1x128xf32, #tpu.memory_space<vmem>>, vector<1x128xf32>
    %200 = vector.broadcast %199 : vector<1x128xf32> to vector<64x128xf32>
    %201 = arith.mulf %198, %200 : vector<64x128xf32>
    %c0_94 = arith.constant 0 : index
    %c0_95 = arith.constant 0 : index
    %202 = vector.load %arg12[%c0_94, %c0_95] : memref<1x128xf32, #tpu.memory_space<vmem>>, vector<1x128xf32>
    %203 = vector.broadcast %202 : vector<1x128xf32> to vector<64x128xf32>
    %204 = arith.addf %201, %203 : vector<64x128xf32>
    %c0_96 = arith.constant 0 : index
    %c0_97 = arith.constant 0 : index
    %c0_98 = arith.constant 0 : index
    %205 = vector.load %arg13[%c0_96, %c0_97, %c0_98] : memref<1x64x128xf32, #tpu.memory_space<vmem>>, vector<1x64x128xf32>
    %206 = vector.shape_cast %205 : vector<1x64x128xf32> to vector<64x128xf32>
    %207 = arith.addf %204, %206 : vector<64x128xf32>
    %c0_99 = arith.constant 0 : index
    %c0_100 = arith.constant 0 : index
    %c0_101 = arith.constant 0 : index
    %208 = vector.load %arg14[%c0_99, %c0_100, %c0_101] : memref<1x64x128xf32, #tpu.memory_space<vmem>>, vector<1x64x128xf32>
    %209 = vector.shape_cast %208 : vector<1x64x128xf32> to vector<64x128xf32>
    %210 = vector.shape_cast %207 : vector<64x128xf32> to vector<1x64x128xf32>
    tpu.vector_store %arg14[%c0_99, %c0_100, %c0_101], %210 {strides = array<i32>} : memref<1x64x128xf32, #tpu.memory_space<vmem>>, vector<1x64x128xf32>,
    return
  }
  func.func @transform_0(%arg0: i32, %arg1: i32) -> (i32, i32, i32) {
    %c0_i32 = arith.constant 0 : i32
    %c0_i32_0 = arith.constant 0 : i32
    %c0_i32_1 = arith.constant 0 : i32
    return %arg0, %c0_i32, %c0_i32_0 : i32, i32, i32
  }
  func.func @transform_1(%arg0: i32, %arg1: i32) -> (i32, i32) {
    %c0_i32 = arith.constant 0 : i32
    %c0_i32_0 = arith.constant 0 : i32
    %c0_i32_1 = arith.constant 0 : i32
    return %c0_i32, %c0_i32_0 : i32, i32
  }
  func.func @transform_2(%arg0: i32, %arg1: i32) -> (i32, i32) {
    %c0_i32 = arith.constant 0 : i32
    %c0_i32_0 = arith.constant 0 : i32
    %c0_i32_1 = arith.constant 0 : i32
    return %c0_i32, %c0_i32_0 : i32, i32
  }
  func.func @transform_3(%arg0: i32, %arg1: i32) -> (i32, i32) {
    %c0_i32 = arith.constant 0 : i32
    %c0_i32_0 = arith.constant 0 : i32
    %c0_i32_1 = arith.constant 0 : i32
    return %c0_i32, %c0_i32_0 : i32, i32
  }
  func.func @transform_4(%arg0: i32, %arg1: i32) -> (i32, i32) {
    %c0_i32 = arith.constant 0 : i32
    %c0_i32_0 = arith.constant 0 : i32
    %c0_i32_1 = arith.constant 0 : i32
    return %c0_i32, %c0_i32_0 : i32, i32
  }
  func.func @transform_5(%arg0: i32, %arg1: i32) -> (i32, i32) {
    %c0_i32 = arith.constant 0 : i32
    %c0_i32_0 = arith.constant 0 : i32
    %c0_i32_1 = arith.constant 0 : i32
    return %c0_i32, %c0_i32_0 : i32, i32
  }
  func.func @transform_6(%arg0: i32, %arg1: i32) -> (i32, i32) {
    %c0_i32 = arith.constant 0 : i32
    %c0_i32_0 = arith.constant 0 : i32
    %c0_i32_1 = arith.constant 0 : i32
    return %c0_i32, %c0_i32_0 : i32, i32
  }
  func.func @transform_7(%arg0: i32, %arg1: i32) -> (i32, i32) {
    %c0_i32 = arith.constant 0 : i32
    %c0_i32_0 = arith.constant 0 : i32
    %c0_i32_1 = arith.constant 0 : i32
    return %c0_i32, %c0_i32_0 : i32, i32
  }
  func.func @transform_8(%arg0: i32, %arg1: i32) -> (i32, i32) {
    %c0_i32 = arith.constant 0 : i32
    %c0_i32_0 = arith.constant 0 : i32
    %c0_i32_1 = arith.constant 0 : i32
    return %c0_i32, %c0_i32_0 : i32, i32
  }
  func.func @transform_9(%arg0: i32, %arg1: i32) -> (i32, i32) {
    %c0_i32 = arith.constant 0 : i32
    %c0_i32_0 = arith.constant 0 : i32
    %c0_i32_1 = arith.constant 0 : i32
    return %c0_i32, %c0_i32_0 : i32, i32
  }
  func.func @transform_10(%arg0: i32, %arg1: i32) -> (i32, i32) {
    %c0_i32 = arith.constant 0 : i32
    %c0_i32_0 = arith.constant 0 : i32
    %c0_i32_1 = arith.constant 0 : i32
    return %c0_i32, %c0_i32_0 : i32, i32
  }
  func.func @transform_11(%arg0: i32, %arg1: i32) -> (i32, i32, i32) {
    %c0_i32 = arith.constant 0 : i32
    %c0_i32_0 = arith.constant 0 : i32
    return %arg0, %arg1, %c0_i32 : i32, i32, i32
  }
  func.func @transform_12(%arg0: i32, %arg1: i32) -> (i32, i32, i32) {
    %c0_i32 = arith.constant 0 : i32
    %c0_i32_0 = arith.constant 0 : i32
    return %arg0, %arg1, %c0_i32 : i32, i32, i32
  }
}

</mosaic_0001>

<bundles_post_ra>
// kernel: tpu_custom_call.1
= control target key start
LH: loop header
LB: loop body
LE: loop exit
PB: predicated region body
PF: predicated region fallthrough
CT: control target
= control target key end

     0   :  { %s2875_s0 = inlined_call_operand.vmem [shape: bf16[2,432,128], index: 0, kind: input, shape index: {}]   ;;  %s2876_s1 = inlined_call_operand.vmem [shape: f32[432,1], index: 1, kind: input, shape index: {}]   ;;  %s2877_s2 = inlined_call_operand.hbm [shape: bf16[128,128], index: 2, kind: input, shape index: {}]   ;;  %s2878_s3 = inlined_call_operand.vmem [shape: f32[1,128], index: 3, kind: input, shape index: {}]   ;;  %s2879_s4 = inlined_call_operand.vmem [shape: f32[1,128], index: 4, kind: input, shape index: {}]   ;;  %s2880_s5 = inlined_call_operand.hbm [shape: f32[9,128], index: 5, kind: input, shape index: {}]   ;;  %s2881_s6 = inlined_call_operand.vmem [shape: f32[1,128], index: 6, kind: input, shape index: {}]   ;;  %s2882_s7 = inlined_call_operand.vmem [shape: f32[1,128], index: 7, kind: input, shape index: {}]   ;;  %s2883_s8 = inlined_call_operand.hbm [shape: bf16[128,128], index: 8, kind: input, shape index: {}]   ;;  %s2884_s9 = inlined_call_operand.vmem [shape: f32[1,128], index: 9, kind: input, shape index: {}]   ;;  %s2885_s10 = inlined_call_operand.vmem [shape: f32[1,128], index: 10, kind: input, shape index: {}]   ;;  %s2886_s11 = inlined_call_operand.hbm [shape: f32[2,256,128], index: 11, kind: input, shape index: {}]   ;;  %s2887_s12 = inlined_call_operand.hbm [shape: f32[2,256,128], index: 12, kind: output, shape index: {}]  }
   0x1   :  { %2897 = sst [smem:[#allocation22_spill]] %s2877_s2 }
   0x2   :  { %2898 = sst [smem:[#allocation23_spill]] %s2879_s4 }
   0x3   :  { %2899 = sst [smem:[#allocation24_spill]] %s2880_s5 }
   0x4   :  { %2900 = sst [smem:[#allocation25_spill]] %s2881_s6 }
   0x5   :  { %2901 = sst [smem:[#allocation26_spill]] %s2882_s7 }
   0x6   :  { %2902 = sst [smem:[#allocation27_spill]] %s2883_s8 }
   0x7   :  { %2903 = sst [smem:[#allocation28_spill]] %s2884_s9 }
   0x8   :  { %2904 = sst [smem:[#allocation29_spill]] %s2885_s10 }
   0x9   :  { %2905 = sst [smem:[#allocation30_spill]] %s2887_s12 }
   0xa   :  { %17 = vsyncpa [#allocation5], 0 }
   0xb   :  { %18 = vsyncpa [#allocation8], 0 }
   0xc   :  { %19 = vsyncpa [#allocation11], 0 }
   0xd   :  { %21 = vsyncpa [#allocation11 + $0x1], 0 }
   0xe   :  { %22 = vsyncpa [#allocation6], 0 }
   0xf   :  { %24 = vsyncpa [#allocation6 + $0x1], 0  ;;  %s2340_s21 = smov 0   ;;  %s2342_s22 = smov 0  }
  0x10   :  { %s2344_s23 = smov 0   ;;  %s2346_s24 = smov 0  }
  0x11   :  { %s2348_s25 = smov 0   ;;  %s2350_s26 = smov 0  }
  0x12   :  { %s2352_s27 = smov 0   ;;  %s2354_s28 = smov 0  }
  0x13 LB: > { %2906 = sst [smem:[#allocation17_spill]] %s2231_s21  ;;  %s1694_s29 = sadd.s32 4294967295, %s2259_s28   ;;  %s2259_s28 = sphi %s2354_s28, %s30_s28   ;;  %s2255_s27 = sphi %s2352_s27, %s2941_s27   ;;  %s2251_s26 = sphi %s2350_s26, %s2936_s26   ;;  %s2247_s25 = sphi %s2348_s25, %s2940_s25   ;;  %s2243_s24 = sphi %s2346_s24, %s2935_s24   ;;  %s2239_s23 = sphi %s2344_s23, %s2939_s23   ;;  %s2235_s22 = sphi %s2342_s22, %s2938_s22   ;;  %s2231_s21 = sphi %s2340_s21, %s2937_s21  }
  0x14   : > { %2907 = sst [smem:[#allocation18_spill]] %s2251_s26  ;;  %s1695_s30 = sadd.s32 4294967294, %s2259_s28  }
  0x15   : > { %p300_p0 = scmp.ne.s32.totalorder %s2235_s22, %s2231_s21  ;;  %p2384_p1 = scmp.eq.s32.totalorder %s1694_s29, 0 }
  0x16   : > { %p2388_p2 = scmp.eq.s32.totalorder %s1694_s29, 7  ;;  %p332_p3 = scmp.eq.s32.totalorder %s1695_s30, 7 }
  0x17   : > { %p2394_p4 = por %p2384_p1, %p300_p0  ;;  %p1696_p5 = scmp.ge.s32.totalorder %s2259_s28, 1 }
  0x18   : > { %p2399_p6 = por %p332_p3, %p300_p0  ;;  %p339_p7 = scmp.lt.s32.totalorder %s2259_s28, 9 }
  0x19   : > { %s2261_s18 = smov [#allocation7]  }
  0x1a   : > { %s2911_s16 = scalar_select %p2399_p6, 1, 0 }
  0x1b   : > { %p2404_p8 = pnand %p1696_p5, %p339_p7  ;;  %s373_s19 = sshll.u32 %s2261_s18, 4  ;;  %s374_s19 = int_to_ptr.vmem [resolvable:$true] %s373_s19 }
  0x1c   : > { %2912 = sst [smem:[#allocation19_spill]] %s2911_s16  ;;  %s2060_s29 = scalar_lea.vmem %s374_s19, 256 }
  0x1d   : > { %p1916_p9 = pneg %p2404_p8  ;;  %p2061_p12 = scmp.ne.s32.totalorder %s374_s19, %s2060_s29 }
  0x1e   : > { %p2068_p3 = scmp.lt.s32.totalorder %s374_s19, %s374_s19  ;;  %p2069_p5 = scmp.lt.s32.totalorder %s2060_s29, %s2060_s29 }
  0x1f   : > { %p2412_p10 = pnand %p1916_p9, %p2384_p1 }
  0x20   : > { %p2070_p7 = por %p2069_p5, %p2068_p3 }
  0x21   : > { %p2051_p11 = pneg %p2412_p10 }
  0x23   : > { %p2063_p13 = pnand %p2061_p12, %p2051_p11 }
  0x25   : > { %p2064_p0 = pneg %p2063_p13 }
  0x27   : > { %p2071_p6 = pnand %p2070_p7, %p2064_p0 }
  0x29   : > { %2074 = shalt.err (!%p2071_p6)
}
  0x2a   : > { %s2891_s30 = smov 128   ;;  %s2892_s18 = smov 8  }
  0x2b   : > { %s2915_s5 = sld [smem:[#allocation24_spill]]  ;;  %s2264_s12 = smov [#allocation4]  }
  0x2c   : > { %s354_s10 = sshll.u32 %s2264_s12, 4  ;;  %s355_s10 = int_to_ptr.vmem [resolvable:$true] %s354_s10 }
  0x2d   : > { %s2086_s9 = scalar_lea.vmem %s355_s10, 1024  ;;  %p2094_p13 = scmp.lt.s32.totalorder %s355_s10, %s355_s10 }
  0x2e   : > { %p2087_p9 = scmp.ne.s32.totalorder %s355_s10, %s2086_s9  ;;  %p2095_p0 = scmp.lt.s32.totalorder %s2086_s9, %s2086_s9 }
  0x30   : > { %p2089_p6 = pnand %p2087_p9, %p2051_p11  ;;  %p2096_p3 = por %p2095_p0, %p2094_p13 }
  0x31   : > { %1922 = dma.hbm_to_vmem [thread:$0]  (!%p2412_p10), %s2915_s5, 256, %s374_s19, [#allocation8], %s2891_s30, %s2891_s30, %s2892_s18  }
  0x32   : > { %p2090_p12 = pneg %p2089_p6 }
  0x34   : > { %p2097_p5 = pnand %p2096_p3, %p2090_p12 }
  0x36   : > { %2100 = shalt.err (!%p2097_p5)
}
  0x37   : > { %s2265_s29 = smov 64   ;;  %s2266_s7 = smov 4  }
  0x38   : > { %s2916_s2 = sld [smem:[#allocation22_spill]]  ;;  %s2267_s12 = smov [#allocation9]  }
  0x39   : > { %s392_s19 = sshll.u32 %s2267_s12, 4  ;;  %s393_s19 = int_to_ptr.vmem [resolvable:$true] %s392_s19 }
  0x3a   : > { %s2112_s30 = scalar_lea.vmem %s393_s19, 1024  ;;  %p2120_p12 = scmp.lt.s32.totalorder %s393_s19, %s393_s19 }
  0x3b   : > { %p2113_p7 = scmp.ne.s32.totalorder %s393_s19, %s2112_s30  ;;  %p2121_p13 = scmp.lt.s32.totalorder %s2112_s30, %s2112_s30 }
  0x3d   : > { %p2115_p9 = pnand %p2113_p7, %p2051_p11  ;;  %p2122_p0 = por %p2121_p13, %p2120_p12 }
  0x3e   : > { %1919 = dma.hbm_to_vmem [thread:$0]  (!%p2412_p10), %s2916_s2, 1024, %s355_s10, [#allocation5], %s2265_s29, %s2265_s29, %s2266_s7  }
  0x3f   : > { %p2116_p6 = pneg %p2115_p9 }
  0x41   : > { %p2123_p3 = pnand %p2122_p0, %p2116_p6 }
  0x43   : > { %2126 = shalt.err (!%p2123_p3)
}
  0x44   : > { %s2917_s8 = sld [smem:[#allocation27_spill]]  ;;  %s39_s10 = sadd.s32 1, %s2251_s26 }
  0x45   : > { %p40_p11 = scmp.ge.s32.totalorder %s39_s10, 4  ;;  %s42_s20 = sadd.s32 1, %s2255_s27 }
  0x46   : > { %s287_s30 = sadd.s32 1, %s2239_s23  ;;  %p294_p5 = scmp.ne.s32.totalorder %s2239_s23, %s2235_s22 }
  0x47   : > { %s2943_s10 = smov (%p40_p11, %s39_s10), 0  ;;  %s2945_s20 = smov (!%p40_p11, %s42_s20), %s2255_s27 }
  0x48   : > { %2918 = sst [smem:[#allocation20_spill]] %s2943_s10  ;;  %s283_s18 = ssub.s32 %s2251_s26, %s2943_s10 }
  0x49   : > { %p295_p7 = scmp.eq.s32.totalorder %s2259_s28, 0  ;;  %p44_p9 = scmp.ge.s32.totalorder %s2945_s20, 2 }
  0x4a   : > { %1925 = dma.hbm_to_vmem [thread:$0]  (!%p2412_p10), %s2917_s8, 1024, %s393_s19, [#allocation8], %s2265_s29, %s2265_s29, %s2266_s7  }
  0x4b   : > { %p2458_p6 = por %p2388_p2, %p294_p5  ;;  %p2462_p10 = por %p295_p7, %p294_p5 }
  0x4c   : > { %p1937_p12 = scmp.lt.s32.totalorder %s2259_s28, 8  ;;  %s2947_s20 = smov (%p44_p9, %s2945_s20), 0 }
  0x4d   : > { %s2919_s21 = scalar_select %p2458_p6, 1, 0 }
  0x4e   : > { %s420_s29 = sand.u32 1, %s2239_s23   ;;  %s1702_s16 = sshll.u32 %s2251_s26, 3 }
  0x4f   : > { %2920 = sst [smem:[#allocation21_spill]] %s2919_s21  ;;  %s282_s12 = ssub.s32 %s2255_s27, %s2947_s20 }
  0x50   : > { %s284_s19 = sor.u32 %s283_s18, %s282_s12  ;;  %s1701_s9 = sshll.u32 %s420_s29, 6 }
  0x51   : > { %p285_p13 = scmp.eq.s32.totalorder %s284_s19, 0  ;;  %s1703_s14 = sshll.u32 %s2255_s27, 5 }
  0x52   : > { %s424_s2 = scalar_lea.vmem [#allocation10], %s1701_s9  ;;  %s430_s10 = sadd.s32 %s1703_s14, %s1702_s16 }
  0x53   : > { %s433_s5 = sshll.u32 %s424_s2, 4  ;;  %s1704_s21 = sshll.u32 %s430_s10, 7  ;;  %s434_s5 = int_to_ptr.vmem [resolvable:$true] %s433_s5 }
  0x54   : > { %s2475_s8 = scalar_select %p285_p13, %s2239_s23, %s287_s30  }
  0x55   : > { %p2481_p2 = pnand %p1937_p12, %p2462_p10  ;;  %s432_s18 = scalar_lea.hbm %s2886_s11, %s1704_s21 }
  0x56   : > { %s421_s12 = scalar_lea.sflag [#allocation11], %s420_s29  ;;  %s2140_s2 = scalar_lea.vmem %s434_s5, 1024 }
  0x57   : > { %p2129_p0 = pneg %p2481_p2  ;;  %p2141_p3 = scmp.ne.s32.totalorder %s434_s5, %s2140_s2 }
  0x58   : > { %s2268_s30 = smov [#allocation10]  }
  0x59   : > { %p2143_p11 = pnand %p2141_p3, %p2129_p0  ;;  %s2145_s10 = sshll.u32 %s2268_s30, 4  ;;  %s2146_s10 = int_to_ptr.vmem [resolvable:$false] %s2145_s10 }
  0x5a   : > { %s2147_s7 = scalar_lea.vmem %s2146_s10, 2048  ;;  %p2148_p7 = scmp.lt.s32.totalorder %s434_s5, %s2146_s10 }
  0x5b   : > { %p2144_p5 = pneg %p2143_p11  ;;  %p2149_p9 = scmp.lt.s32.totalorder %s2147_s7, %s2140_s2 }
  0x5d   : > { %p2150_p10 = por %p2149_p9, %p2148_p7 }
  0x5f   : > { %p2151_p12 = pnand %p2150_p10, %p2144_p5 }
  0x61   : > { %2154 = shalt.err (!%p2151_p12)
}
  0x62   : > { %s2923_s4 = smov 8   ;;  %s2924_s26 = smov 128  }
  0x63   : > { %1929 = dma.hbm_to_vmem [thread:$0]  (!%p2481_p2), %s432_s18, 1024, %s434_s5, %s421_s12, %s2924_s26, %s2924_s26, %s2923_s4  }
  0x64   : > { %445 = sbr.rel (%p2404_p8) target bundleno = 668 (0x29c), region = 68 }
  0x69   : > { %2214 = dma.done.wait (%p2384_p1), [#allocation5], 1024  }
  0x6a   : > { %2216 = vsyncadd (%p2384_p1), [#allocation5], 4294966272 }
  0x6b   : > { %2218 = dma.done.wait (%p2384_p1), [#allocation8], 1280  }
  0x6c   : > { %2220 = vsyncadd (%p2384_p1), [#allocation8], 4294966016  ;;  %s2506_s6 = sand.u32 1, %s2235_s22  }
  0x6d   : > { %s1709_s5 = sshll.u32 %s2506_s6, 6  ;;  %s460_s17 = scalar_lea.sflag [#allocation11], %s2506_s6 }
  0x6e   : > { %s2512_s21 = scalar_lea.vmem [#allocation10], %s1709_s5 }
  0x6f   : > { %2222 = dma.done.wait (%p2394_p4), %s460_s17, 1024  }
  0x70   : > { %2224 = vsyncadd (%p2394_p4), %s460_s17, 4294966272  ;;  %p509_p1 = scmp.lt.s32.totalorder %s2247_s25, 1  ;;  %v2269_v0 = vmov 0.0   ;;  %vm2270_vm0 = vmmov 0   ;;  %v2271_v1 = vmov 0   ;;  %s517_s29 = smul.u32 96, %s2243_s24 }
  0x71   : > { %1823 = vmatprep.subr.bf16.mxu0 %v2269_v0  ;;  %1839 = vmatprep.mubr.msk.bf16.mxu0 %vm2270_vm0, %v2269_v0  ;;  %v2020_v2 = vld [vmem:[#allocation4 + $0x38] sm:$0xff]   ;;  %v2021_v3 = vld [vmem:[#allocation4 + $0x30] sm:$0xff]   ;;  %v2022_v4 = vld [vmem:[#allocation4 + $0x28] sm:$0xff]   ;;  %s2928_s2 = sld [smem:[#allocation28_spill]]  ;;  %s2799_s4 = scalar_lea.vmem [#allocation12], %s1709_s5 }
  0x72   : > { %2018 = vset.pattern.permute.xlu0 %v2271_v1  ;;  %2019 = vset.pattern.permute.xlu1 %v2271_v1  ;;  %s510_s13 = scalar_select %p509_p1, %s2247_s25, 1  ;;  %v2023_v5 = vld [vmem:[#allocation4 + $0x20] sm:$0xff]   ;;  %v2024_v6 = vld [vmem:[#allocation4 + $0x18] sm:$0xff]   ;;  %v2025_v9 = vld [vmem:[#allocation4 + $0x10] sm:$0xff]  }
  0x73   : > { %s518_s15 = sshra.s32 %s517_s29, 3  ;;  %1824 = vmatpush3.bf16.msra.mxu0 %v2020_v2  ;;  %s2535_s10 = scalar_lea.vmem %s2876_s1, %s517_s29  ;;  %v2026_v12 = vld [vmem:[#allocation4 + $0x8] sm:$0xff]   ;;  %v2027_v15 = vld [vmem:[#allocation4] sm:$0xff]   ;;  %v2039_v39 = vld [vmem:[#allocation9 + $0x28] sm:$0xff]  }
  0x74   : > { %s1899_s16 = smul.u32 216, %s510_s13  ;;  %1825 = vmatprep.subr.bf16.mxu0 %v2269_v0  ;;  %s1712_s18 = sshll.u32 %s518_s15, 2  ;;  %v850_v7 = vld [vmem:[%s2535_s10] sm:$0xff]  ;;  %v852_v8 = vld [vmem:[%s2535_s10 + $0x10] sm:$0xff]  ;;  %v851_v10 = vld [vmem:[%s2535_s10 + $0x8] sm:$0xff] }
  0x75   : > { %870 = vperm.xlu0 %2018, %v850_v7   ;;  %880 = vperm.xlu1 %2019, %v852_v8   ;;  %v853_v11 = vld [vmem:[%s2535_s10 + $0x18] sm:$0xff]  ;;  %v854_v13 = vld [vmem:[%s2535_s10 + $0x20] sm:$0xff]  ;;  %v855_v14 = vld [vmem:[%s2535_s10 + $0x28] sm:$0xff]  ;;  %s2925_s13 = sld [smem:[#allocation23_spill]]  ;;  %s1758_s5 = sshll.u32 %s2243_s24, 3 }
  0x76   : > { %s513_s14 = scalar_lea.vmem %s2875_s0, %s1899_s16  ;;  %v856_v16 = vld [vmem:[%s2535_s10 + $0x30] sm:$0xff]  ;;  %v857_v17 = vld [vmem:[%s2535_s10 + $0x38] sm:$0xff]  ;;  %v858_v19 = vld [vmem:[%s2535_s10 + $0x40] sm:$0xff]  ;;  %s2926_s15 = sld [smem:[#allocation25_spill]] }
  0x77   : > { %1826 = vmatpush3.bf16.msra.mxu0 %v2021_v3  ;;  %s2529_s12 = scalar_lea.vmem %s513_s14, %s1712_s18  ;;  %v859_v20 = vld [vmem:[%s2535_s10 + $0x48] sm:$0xff]  ;;  %v860_v21 = vld [vmem:[%s2535_s10 + $0x50] sm:$0xff]  ;;  %v861_v22 = vld [vmem:[%s2535_s10 + $0x58] sm:$0xff]  ;;  %v998_v3 = vlaneseq  ;;  %s2927_s14 = sld [smem:[#allocation26_spill]] }
  0x78   : > { %1827 = vmatprep.subr.bf16.mxu0 %v2269_v0  ;;  %v2028_v18 = vld [vmem:[%s2529_s12] sm:$0xff]   ;;  %v2029_v23 = vld [vmem:[%s2529_s12 + $0x8] sm:$0xff]   ;;  %v864_v26 = vld [vmem:[%s2535_s10 + $0x70] sm:$0xff]  ;;  %s2929_s7 = sld [smem:[#allocation29_spill]]  ;;  %s1759_s26 = sshll.u32 %s2247_s25, 5 }
  0x79   : > { %875 = vperm.xlu0 %2018, %v851_v10   ;;  %885 = vperm.xlu1 %2019, %v853_v11   ;;  %v862_v24 = vld [vmem:[%s2535_s10 + $0x60] sm:$0xff]  ;;  %v863_v25 = vld [vmem:[%s2535_s10 + $0x68] sm:$0xff]  ;;  %v865_v27 = vld [vmem:[%s2535_s10 + $0x78] sm:$0xff]  ;;  %s1554_s17 = sadd.s32 %s1759_s26, %s1758_s5  ;;  %s1557_s25 = sshll.u32 %s2799_s4, 4  ;;  %s2815_s25 = int_to_ptr.vmem [resolvable:$true] %s1557_s25 }
  0x7a   : > { %v2030_v28 = vld [vmem:[%s2529_s12 + $0x10] sm:$0xff]   ;;  %v866_v29 = vld [vmem:[%s2535_s10 + $0x80] sm:$0xff]  ;;  %v867_v30 = vld [vmem:[%s2535_s10 + $0x88] sm:$0xff]  ;;  %s1542_s9 = scalar_lea.sflag [#allocation6], %s2506_s6 }
  0x7b   : > { %1828 = vmatpush3.bf16.msra.mxu0 %v2022_v4  ;;  %v2031_v31 = vld [vmem:[%s2529_s12 + $0x18] sm:$0xff]   ;;  %v2032_v32 = vld [vmem:[%s2529_s12 + $0x20] sm:$0xff]   ;;  %v2033_v33 = vld [vmem:[%s2529_s12 + $0x28] sm:$0xff]  }
  0x7c   : > { %1829 = vmatprep.subr.bf16.mxu0 %v2269_v0  ;;  %v2034_v34 = vld [vmem:[%s2529_s12 + $0x30] sm:$0xff]   ;;  %v2035_v35 = vld [vmem:[%s2529_s12 + $0x38] sm:$0xff]   ;;  %v2036_v36 = vld [vmem:[%s2529_s12 + $0x40] sm:$0xff]  }
  0x7d   : > { %890 = vperm.xlu0 %2018, %v854_v13   ;;  %895 = vperm.xlu1 %2019, %v855_v14   ;;  %v2037_v37 = vld [vmem:[#allocation9 + $0x38] sm:$0xff]   ;;  %v2038_v38 = vld [vmem:[#allocation9 + $0x30] sm:$0xff]   ;;  %v2040_v40 = vld [vmem:[#allocation9 + $0x20] sm:$0xff]  }
  0x7e   : > { %1875 = vmatprep.subr.bf16.mxu1 %v2037_v37  ;;  %v2041_v41 = vld [vmem:[#allocation9 + $0x18] sm:$0xff]   ;;  %v2042_v42 = vld [vmem:[#allocation9 + $0x10] sm:$0xff]   ;;  %v2044_v43 = vld [vmem:[#allocation9 + $0x8] sm:$0xff]  }
  0x7f   : > { %1830 = vmatpush3.bf16.msra.mxu0 %v2023_v5  ;;  %1876 = vmatpush3.bf16.msra.mxu1 %v2037_v37  ;;  %v2045_v44 = vld [vmem:[#allocation9] sm:$0xff]  }
  0x80   : > { %1831 = vmatprep.subr.bf16.mxu0 %v2269_v0  ;;  %1877 = vmatprep.subr.bf16.mxu1 %v2038_v38  ;;  %v2587_v45 = vld [vmem:[%s2878_s3] ss:$0 sm:$0xff] }
  0x81   : > { %900 = vperm.xlu0 %2018, %v856_v16   ;;  %905 = vperm.xlu1 %2019, %v857_v17   ;;  %v2592_v47 = vld [vmem:[%s2925_s13] ss:$0 sm:$0xff]  ;;  %s1760_s13 = sshll.u32 %s1554_s17, 7 }
  0x83   : > { %1832 = vmatpush3.bf16.msra.mxu0 %v2024_v6  ;;  %1878 = vmatpush3.bf16.msra.mxu1 %v2038_v38 }
  0x84   : > { %1833 = vmatprep.subr.bf16.mxu0 %v2269_v0  ;;  %1879 = vmatprep.subr.bf16.mxu1 %v2039_v39 }
  0x85   : > { %910 = vperm.xlu0 %2018, %v858_v19   ;;  %915 = vperm.xlu1 %2019, %v859_v20  }
  0x87   : > { %1834 = vmatpush3.bf16.msra.mxu0 %v2025_v9  ;;  %1880 = vmatpush3.bf16.msra.mxu1 %v2039_v39 }
  0x88   : > { %1835 = vmatprep.subr.bf16.mxu0 %v2269_v0  ;;  %1881 = vmatprep.subr.bf16.mxu1 %v2040_v40 }
  0x89   : > { %920 = vperm.xlu0 %2018, %v860_v21   ;;  %925 = vperm.xlu1 %2019, %v861_v22  }
  0x8b   : > { %1836 = vmatpush3.bf16.msra.mxu0 %v2026_v12  ;;  %1882 = vmatpush3.bf16.msra.mxu1 %v2040_v40  ;;  %v2602_v12 = vshrl.u32 %v998_v3, 7 }
  0x8c   : > { %1837 = vmatprep.subr.bf16.mxu0 %v2269_v0  ;;  %1883 = vmatprep.subr.bf16.mxu1 %v2041_v41 }
  0x8d   : > { %930 = vperm.xlu0 %2018, %v862_v24   ;;  %935 = vperm.xlu1 %2019, %v863_v25   ;;  %v1004_v17 = vsub.s32 1, %v2602_v12  ;;  %v1000_v22 = vsub.s32 0, %v2602_v12 }
  0x8f   : > { %1838 = vmatpush3.bf16.msra.mxu0 %v2027_v15  ;;  %1884 = vmatpush3.bf16.msra.mxu1 %v2041_v41 }
  0x90   : > { %1885 = vmatprep.subr.bf16.mxu1 %v2042_v42 }
  0x91   : > { %940 = vperm.xlu0 %2018, %v864_v26   ;;  %945 = vperm.xlu1 %2019, %v865_v27   ;;  %v2611_v26 = vld [vmem:[#allocation7] sm:$0xff] }
  0x92   : > { %1840 = vmatmul.mubr.bf16.vlgmr.msra.gmra.mxu0 %v2028_v18 }
  0x93   : > { %1843 = vmatprep.mubr.msk.bf16.mxu0 %vm2270_vm0, %v2269_v0  ;;  %1886 = vmatpush3.bf16.msra.mxu1 %v2042_v42 }
  0x94   : > { %1887 = vmatprep.subr.bf16.mxu1 %v2044_v43 }
  0x95   : > { %950 = vperm.xlu0 %2018, %v866_v29   ;;  %955 = vperm.xlu1 %2019, %v867_v30  }
  0x97   : > { %1888 = vmatpush3.bf16.msra.mxu1 %v2044_v43 }
  0x98   : > { %1889 = vmatprep.subr.bf16.mxu1 %v2045_v44 }
  0x9a   : > { %1844 = vmatmul.mubr.bf16.gmra.mxu0 %v2029_v23 }
  0x9b   : > { %1847 = vmatprep.mubr.msk.bf16.mxu0 %vm2270_vm0, %v2269_v0  ;;  %1890 = vmatpush3.bf16.msra.mxu1 %v2045_v44  ;;  %v1012_v44 = vsub.s32 3, %v2602_v12 }
  0xa2   : > { %1848 = vmatmul.mubr.bf16.gmra.mxu0 %v2030_v28  ;;  %v2614_v28 = vrot.slane %v2611_v26, %v1004_v17 }
  0xa3   : > { %1851 = vmatprep.mubr.msk.bf16.mxu0 %vm2270_vm0, %v2269_v0 }
  0xaa   : > { %1852 = vmatmul.mubr.bf16.gmra.mxu0 %v2031_v31 }
  0xab   : > { %1855 = vmatprep.mubr.msk.bf16.mxu0 %vm2270_vm0, %v2269_v0 }
  0xb2   : > { %1856 = vmatmul.mubr.bf16.gmra.mxu0 %v2032_v32 }
  0xb3   : > { %1859 = vmatprep.mubr.msk.bf16.mxu0 %vm2270_vm0, %v2269_v0 }
  0xba   : > { %1860 = vmatmul.mubr.bf16.gmra.mxu0 %v2033_v33  ;;  %v2619_v33 = vrot.slane %v2611_v26, %v1000_v22 }
  0xbb   : > { %1863 = vmatprep.mubr.msk.bf16.mxu0 %vm2270_vm0, %v2269_v0 }
  0xc2   : > { %1864 = vmatmul.mubr.bf16.gmra.mxu0 %v2034_v34  ;;  %v1008_v34 = vsub.s32 2, %v2602_v12 }
  0xc3   : > { %1867 = vmatprep.mubr.msk.bf16.mxu0 %vm2270_vm0, %v2269_v0 }
  0xca   : > { %1868 = vmatmul.mubr.bf16.gmra.mxu0 %v2035_v35 }
  0xcb   : > { %1871 = vmatprep.mubr.msk.bf16.mxu0 %vm2270_vm0, %v2269_v0 }
  0xd2   : > { %1872 = vmatmul.mubr.bf16.gmra.mxu0 %v2036_v36 }
  0xf0   : > { %v871_v52 = vpop.permute.xlu0 %870  ;;  %v881_v7 = vpop.permute.xlu1 %880 }
  0xf4   : > { %v876_v63 = vpop.permute.xlu0 %875  ;;  %v886_v20 = vpop.permute.xlu1 %885 }
  0xf8   : > { %v891_v35 = vpop.permute.xlu0 %890 }
 0x152   : > { %v692_v46 = vpop.f32.mrf.mxu0 }
 0x153   : > { %v770_v48 = vmul.f32 %v2587_v45, %v692_v46  ;;  %v1016_v46 = vsub.s32 4, %v2602_v12 }
 0x154   : > { %v1841_v49 = vpop.f32.mrf.mxu0 }
 0x155   : > { %v795_v50 = vadd.f32 %v2592_v47, %v770_v48 }
 0x156   : > { %v695_v51 = vpop.f32.mrf.mxu0 }
 0x157   : > { %v771_v53 = vmul.f32 %v2587_v45, %v695_v51  ;;  %v813_v54 = vmax.f32 %v795_v50, 0.0  ;;  %v2633_v51 = vrot.slane %v2611_v26, %v1008_v34 }
 0x158   : > { %v1842_v55 = vpop.f32.mrf.mxu0 }
 0x159   : > { %v796_v56 = vadd.f32 %v2592_v47, %v771_v53  ;;  %v831_v57 = vmin.f32 %v813_v54, 6.0 }
 0x15a   : > { %v700_v58 = vpop.f32.mrf.mxu0 }
 0x15b   : > { %v958_v59 = vmul.f32 %v871_v52, %v831_v57  ;;  %v772_v60 = vmul.f32 %v2587_v45, %v700_v58  ;;  %v814_v61 = vmax.f32 %v796_v56, 0.0  ;;  %v896_v52 = vpop.permute.xlu1 %895 }
 0x15c   : > { %v1845_v62 = vpop.f32.mrf.mxu0 }
 0x15d   : > { %976 = vst [vmem:[#allocation2] sm:$0xff] %v958_v59  ;;  %v797_v0 = vadd.f32 %v2592_v47, %v772_v60  ;;  %v832_v1 = vmin.f32 %v814_v61, 6.0  ;;  %v1036_v50 = vmul.f32 %v2619_v33, %v958_v59  ;;  %v2639_v59 = vrot.slane %v2611_v26, %v1012_v44 }
 0x15e   : > { %v703_v2 = vpop.f32.mrf.mxu0 }
 0x15f   : > { %v815_v4 = vmax.f32 %v797_v0, 0.0  ;;  %v959_v5 = vmul.f32 %v876_v63, %v832_v1  ;;  %v773_v6 = vmul.f32 %v2587_v45, %v703_v2  ;;  %v2642_v1 = vrot.slane %v2611_v26, %v1016_v46  ;;  %v901_v2 = vpop.permute.xlu0 %900 }
 0x160   : > { %v1846_v8 = vpop.f32.mrf.mxu0 }
 0x161   : > { %v833_v9 = vmin.f32 %v815_v4, 6.0  ;;  %977 = vst [vmem:[#allocation2 + $0x8] sm:$0xff] %v959_v5  ;;  %v798_v10 = vadd.f32 %v2592_v47, %v773_v6  ;;  %v1037_v55 = vmul.f32 %v2619_v33, %v959_v5 }
 0x162   : > { %v708_v11 = vpop.f32.mrf.mxu0 }
 0x163   : > { %v960_v13 = vmul.f32 %v881_v7, %v833_v9  ;;  %v816_v14 = vmax.f32 %v798_v10, 0.0  ;;  %v774_v15 = vmul.f32 %v2587_v45, %v708_v11  ;;  %v1020_v11 = vsub.s32 5, %v2602_v12 }
 0x164   : > { %v1849_v16 = vpop.f32.mrf.mxu0 }
 0x165   : > { %978 = vst [vmem:[#allocation2 + $0x10] sm:$0xff] %v960_v13  ;;  %v834_v18 = vmin.f32 %v816_v14, 6.0  ;;  %v799_v19 = vadd.f32 %v2592_v47, %v774_v15 }
 0x166   : > { %v711_v21 = vpop.f32.mrf.mxu0 }
 0x167   : > { %v2608_v23 = vmul.f32 %v886_v20, %v834_v18  ;;  %v817_v24 = vmax.f32 %v799_v19, 0.0  ;;  %v775_v25 = vmul.f32 %v2587_v45, %v711_v21  ;;  %v906_v18 = vpop.permute.xlu1 %905  ;;  %v1024_v19 = vsub.s32 6, %v2602_v12 }
 0x168   : > { %v1850_v27 = vpop.f32.mrf.mxu0  ;;  %v1038_v29 = vld [vmem:[#allocation2 + $0x1] sm:$0xff] }
 0x169   : > { %979 = vst [vmem:[#allocation2 + $0x18] sm:$0xff] %v2608_v23  ;;  %v835_v30 = vmin.f32 %v817_v24, 6.0  ;;  %v800_v31 = vadd.f32 %v2592_v47, %v775_v25  ;;  %v1040_v41 = vmul.f32 %v1038_v29, %v2614_v28  ;;  %v1044_v56 = vld [vmem:[#allocation2 + $0x2] sm:$0xff]  ;;  %v1052_v16 = vmul.f32 %v2639_v59, %v2608_v23 }
 0x16a   : > { %v716_v32 = vpop.f32.mrf.mxu0  ;;  %v1046_v4 = vmul.f32 %v1044_v56, %v2633_v51  ;;  %v1118_v27 = vmul.f32 %v2619_v33, %v2608_v23  ;;  %v2671_v23 = vrot.slane %v2611_v26, %v1024_v19  ;;  %v2695_v19 = vld [vmem:[#allocation7 + $0x8] ss:$0 sm:$0xff] }
 0x16b   : > { %v776_v36 = vmul.f32 %v2587_v45, %v716_v32  ;;  %v2623_v38 = vmul.f32 %v891_v35, %v835_v30  ;;  %v818_v39 = vmax.f32 %v800_v31, 0.0  ;;  %v1042_v60 = vadd.f32 %v1040_v41, %v1036_v50 }
 0x16c   : > { %v1039_v37 = vld [vmem:[#allocation2 + $0x9] sm:$0xff]  ;;  %v1853_v40 = vpop.f32.mrf.mxu0  ;;  %v2665_v32 = vrot.slane %v2611_v26, %v1020_v11 }
 0x16d   : > { %v801_v42 = vadd.f32 %v2592_v47, %v776_v36  ;;  %v1041_v43 = vmul.f32 %v1039_v37, %v2614_v28  ;;  %980 = vst [vmem:[#allocation2 + $0x20] sm:$0xff] %v2623_v38  ;;  %v836_v48 = vmin.f32 %v818_v39, 6.0  ;;  %v1045_v61 = vld [vmem:[#allocation2 + $0xa] sm:$0xff]  ;;  %v1048_v10 = vadd.f32 %v1046_v4, %v1042_v60 }
 0x16e   : > { %v719_v49 = vpop.f32.mrf.mxu0  ;;  %v1047_v8 = vmul.f32 %v1045_v61, %v2633_v51  ;;  %v1053_v29 = vmul.f32 %v2639_v59, %v2623_v38  ;;  %v1028_v36 = vsub.s32 7, %v2602_v12  ;;  %v1119_v50 = vmul.f32 %v2619_v33, %v2623_v38 }
 0x16f   : > { %v819_v53 = vmax.f32 %v801_v42, 0.0  ;;  %v777_v54 = vmul.f32 %v2587_v45, %v719_v49  ;;  %v963_v57 = vmul.f32 %v896_v52, %v836_v48  ;;  %v1043_v0 = vadd.f32 %v1041_v43, %v1037_v55 }
 0x170   : > { %v1854_v58 = vpop.f32.mrf.mxu0  ;;  %v1054_v31 = vadd.f32 %v1052_v16, %v1048_v10 }
 0x171   : > { %v837_v62 = vmin.f32 %v819_v53, 6.0  ;;  %v802_v63 = vadd.f32 %v2592_v47, %v777_v54  ;;  %981 = vst [vmem:[#allocation2 + $0x28] sm:$0xff] %v963_v57  ;;  %v1049_v15 = vadd.f32 %v1047_v8, %v1043_v0  ;;  %v911_v53 = vpop.permute.xlu0 %910  ;;  %v2681_v57 = vrot.slane %v2611_v26, %v1028_v36 }
 0x172   : > { %v724_v3 = vpop.f32.mrf.mxu0 }
 0x173   : > { %v2645_v5 = vmul.f32 %v901_v2, %v837_v62  ;;  %v820_v6 = vmax.f32 %v802_v63, 0.0  ;;  %v778_v7 = vmul.f32 %v2587_v45, %v724_v3  ;;  %v1055_v39 = vadd.f32 %v1053_v29, %v1049_v15 }
 0x174   : > { %v1857_v9 = vpop.f32.mrf.mxu0  ;;  %v1056_v13 = vld [vmem:[#allocation2 + $0x19] sm:$0xff] }
 0x175   : > { %982 = vst [vmem:[#allocation2 + $0x30] sm:$0xff] %v2645_v5  ;;  %v838_v14 = vmin.f32 %v820_v6, 6.0  ;;  %v1122_v17 = vmul.f32 %v1056_v13, %v2614_v28  ;;  %v1058_v21 = vmul.f32 %v1056_v13, %v2642_v1  ;;  %v803_v24 = vadd.f32 %v2592_v47, %v778_v7  ;;  %v1062_v34 = vld [vmem:[#allocation2 + $0x1a] sm:$0xff]  ;;  %v916_v13 = vpop.permute.xlu1 %915 }
 0x176   : > { %v727_v20 = vpop.f32.mrf.mxu0  ;;  %v1128_v12 = vmul.f32 %v1062_v34, %v2633_v51  ;;  %v1064_v56 = vmul.f32 %v1062_v34, %v2665_v32  ;;  %v1134_v26 = vmul.f32 %v2639_v59, %v2645_v5  ;;  %v1070_v11 = vmul.f32 %v2671_v23, %v2645_v5 }
 0x177   : > { %v2656_v22 = vmul.f32 %v906_v18, %v838_v14  ;;  %v779_v25 = vmul.f32 %v2587_v45, %v727_v20  ;;  %v821_v37 = vmax.f32 %v803_v24, 0.0  ;;  %v1124_v40 = vadd.f32 %v1122_v17, %v1118_v27 }
 0x178   : > { %v1858_v30 = vpop.f32.mrf.mxu0  ;;  %v1057_v35 = vld [vmem:[#allocation2 + $0x21] sm:$0xff]  ;;  %v1060_v43 = vadd.f32 %v1058_v21, %v1054_v31  ;;  %v1188_v29 = vmul.f32 %v2619_v33, %v2645_v5 }
 0x179   : > { %983 = vst [vmem:[#allocation2 + $0x38] sm:$0xff] %v2656_v22  ;;  %v1059_v41 = vmul.f32 %v1057_v35, %v2642_v1  ;;  %v1063_v44 = vld [vmem:[#allocation2 + $0x22] sm:$0xff]  ;;  %v1123_v46 = vmul.f32 %v1057_v35, %v2614_v28  ;;  %v839_v48 = vmin.f32 %v821_v37, 6.0  ;;  %v804_v49 = vadd.f32 %v2592_v47, %v779_v25 }
 0x17a   : > { %v732_v42 = vpop.f32.mrf.mxu0  ;;  %v1130_v61 = vadd.f32 %v1128_v12, %v1124_v40  ;;  %v1065_v62 = vmul.f32 %v1063_v44, %v2665_v32  ;;  %v1066_v2 = vadd.f32 %v1064_v56, %v1060_v43  ;;  %v1129_v7 = vmul.f32 %v1063_v44, %v2633_v51 }
 0x17b   : > { %v1061_v52 = vadd.f32 %v1059_v41, %v1055_v39  ;;  %v780_v54 = vmul.f32 %v2587_v45, %v732_v42  ;;  %v966_v58 = vmul.f32 %v911_v53, %v839_v48  ;;  %v822_v60 = vmax.f32 %v804_v49, 0.0  ;;  %v921_v39 = vpop.permute.xlu0 %920 }
 0x17c   : > { %v1861_v55 = vpop.f32.mrf.mxu0  ;;  %v1125_v63 = vadd.f32 %v1123_v46, %v1119_v50  ;;  %v1071_v14 = vmul.f32 %v2671_v23, %v2656_v22  ;;  %v1136_v18 = vadd.f32 %v1134_v26, %v1130_v61  ;;  %v1072_v27 = vadd.f32 %v1070_v11, %v1066_v2 }
 0x17d   : > { %v805_v38 = vadd.f32 %v2592_v47, %v780_v54  ;;  %984 = vst [vmem:[#allocation2 + $0x40] sm:$0xff] %v966_v58  ;;  %v840_v3 = vmin.f32 %v822_v60, 6.0  ;;  %v1067_v6 = vadd.f32 %v1065_v62, %v1061_v52  ;;  %v1135_v35 = vmul.f32 %v2639_v59, %v2656_v22 }
 0x17e   : > { %v735_v0 = vpop.f32.mrf.mxu0  ;;  %v1131_v17 = vadd.f32 %v1129_v7, %v1125_v63  ;;  %v1189_v37 = vmul.f32 %v2619_v33, %v2656_v22 }
 0x17f   : > { %v781_v4 = vmul.f32 %v2587_v45, %v735_v0  ;;  %v823_v9 = vmax.f32 %v805_v38, 0.0  ;;  %v967_v24 = vmul.f32 %v916_v13, %v840_v3  ;;  %v1073_v34 = vadd.f32 %v1071_v14, %v1067_v6  ;;  %v2724_v14 = vld [vmem:[%s2926_s15] ss:$0 sm:$0xff]  ;;  %s2931_s15 = sld [smem:[#allocation30_spill]] }
 0x180   : > { %v1074_v8 = vld [vmem:[#allocation2 + $0x31] sm:$0xff]  ;;  %v1862_v10 = vpop.f32.mrf.mxu0  ;;  %v1137_v5 = vadd.f32 %v1135_v35, %v1131_v17 }
 0x181   : > { %v1076_v15 = vmul.f32 %v1074_v8, %v2681_v57  ;;  %v1140_v16 = vmul.f32 %v1074_v8, %v2642_v1  ;;  %v1080_v20 = vld [vmem:[#allocation2 + $0x32] sm:$0xff]  ;;  %v1192_v21 = vmul.f32 %v1074_v8, %v2614_v28  ;;  %v841_v30 = vmin.f32 %v823_v9, 6.0  ;;  %985 = vst [vmem:[#allocation2 + $0x48] sm:$0xff] %v967_v24  ;;  %v926_v8 = vpop.permute.xlu1 %925 }
 0x182   : > { %v740_v25 = vpop.f32.mrf.mxu0  ;;  %v806_v31 = vadd.f32 %v2592_v47, %v781_v4  ;;  %v1082_v42 = vmul.f32 %v2695_v19, %v1080_v20  ;;  %v1146_v46 = vmul.f32 %v1080_v20, %v2665_v32  ;;  %v1198_v52 = vmul.f32 %v1080_v20, %v2633_v51 }
 0x183   : > { %v1142_v36 = vadd.f32 %v1140_v16, %v1136_v18  ;;  %v1078_v41 = vadd.f32 %v1076_v15, %v1072_v27  ;;  %v1194_v43 = vadd.f32 %v1192_v21, %v1188_v29  ;;  %v968_v44 = vmul.f32 %v921_v39, %v841_v30  ;;  %v931_v29 = vpop.permute.xlu0 %930 }
 0x184   : > { %v1865_v40 = vpop.f32.mrf.mxu0  ;;  %v1075_v48 = vld [vmem:[#allocation2 + $0x39] sm:$0xff]  ;;  %v824_v49 = vmax.f32 %v806_v31, 0.0  ;;  %v782_v50 = vmul.f32 %v2587_v45, %v740_v25  ;;  %v1152_v55 = vmul.f32 %v2671_v23, %v967_v24  ;;  %v1204_v60 = vmul.f32 %v2639_v59, %v967_v24 }
 0x185   : > { %v1077_v22 = vmul.f32 %v1075_v48, %v2681_v57  ;;  %v1081_v53 = vld [vmem:[#allocation2 + $0x3a] sm:$0xff]  ;;  %v1141_v54 = vmul.f32 %v1075_v48, %v2642_v1  ;;  %986 = vst [vmem:[#allocation2 + $0x50] sm:$0xff] %v968_v44  ;;  %v1148_v56 = vadd.f32 %v1146_v46, %v1142_v36  ;;  %v1193_v58 = vmul.f32 %v1075_v48, %v2614_v28  ;;  %s2821_s19 = scalar_lea.hbm %s2931_s15, %s1760_s13 }
 0x186   : > { %v743_v12 = vpop.f32.mrf.mxu0  ;;  %v1258_v61 = vmul.f32 %v2619_v33, %v967_v24  ;;  %v1200_v63 = vadd.f32 %v1198_v52, %v1194_v43  ;;  %v1084_v2 = vadd.f32 %v1082_v42, %v1078_v41  ;;  %v1147_v3 = vmul.f32 %v1081_v53, %v2665_v32 }
 0x187   : > { %v1079_v38 = vadd.f32 %v1077_v22, %v1073_v34  ;;  %v1143_v0 = vadd.f32 %v1141_v54, %v1137_v5  ;;  %v1195_v4 = vadd.f32 %v1193_v58, %v1189_v37  ;;  %v842_v6 = vmin.f32 %v824_v49, 6.0  ;;  %v2737_v5 = vld [vmem:[%s2927_s14] ss:$0 sm:$0xff]  ;;  %s2155_s14 = scalar_lea.vmem %s2815_s25, 1024 }
 0x188   : > { %v1866_v62 = vpop.f32.mrf.mxu0  ;;  %v807_v7 = vadd.f32 %v2592_v47, %v782_v50  ;;  %v1083_v9 = vmul.f32 %v2695_v19, %v1081_v53  ;;  %v1199_v10 = vmul.f32 %v1081_v53, %v2633_v51  ;;  %v783_v11 = vmul.f32 %v2587_v45, %v743_v12  ;;  %p2156_p4 = scmp.ne.s32.totalorder %s2815_s25, %s2155_s14 }
 0x189   : > { %v1149_v15 = vadd.f32 %v1147_v3, %v1143_v0  ;;  %v1154_v16 = vadd.f32 %v1152_v55, %v1148_v56  ;;  %v969_v17 = vmul.f32 %v926_v8, %v842_v6  ;;  %v1206_v30 = vadd.f32 %v1204_v60, %v1200_v63  ;;  %v936_v60 = vpop.permute.xlu1 %935 }
 0x18a   : > { %v748_v26 = vpop.f32.mrf.mxu0  ;;  %v825_v18 = vmax.f32 %v807_v7, 0.0  ;;  %v1201_v21 = vadd.f32 %v1199_v10, %v1195_v4  ;;  %v808_v24 = vadd.f32 %v2592_v47, %v783_v11  ;;  %v1085_v27 = vadd.f32 %v1083_v9, %v1079_v38  ;;  %p2157_p8 = pnand %p2156_p4, %p2458_p6 }
 0x18b   : > { %v784_v13 = vmul.f32 %v2587_v45, %v748_v26  ;;  %v1153_v31 = vmul.f32 %v2671_v23, %v968_v44  ;;  %987 = vst [vmem:[#allocation2 + $0x58] sm:$0xff] %v969_v17  ;;  %v1092_v37 = vmul.f32 %v2724_v14, %v1084_v2  ;;  %v1205_v41 = vmul.f32 %v2639_v59, %v968_v44  ;;  %v941_v2 = vpop.permute.xlu0 %940 }
 0x18c   : > { %v1869_v20 = vpop.f32.mrf.mxu0  ;;  %v1156_v34 = vld [vmem:[#allocation2 + $0x49] sm:$0xff]  ;;  %v843_v35 = vmin.f32 %v825_v18, 6.0  ;;  %v1259_v43 = vmul.f32 %v2619_v33, %v968_v44  ;;  %v826_v50 = vmax.f32 %v808_v24, 0.0  ;;  %v1093_v54 = vmul.f32 %v2724_v14, %v1085_v27  ;;  %p2158_p13 = pneg %p2157_p8 }
 0x18d   : > { %v809_v25 = vadd.f32 %v2592_v47, %v784_v13  ;;  %v1158_v39 = vmul.f32 %v1156_v34, %v2681_v57  ;;  %v1162_v40 = vld [vmem:[#allocation2 + $0x4a] sm:$0xff]  ;;  %v1210_v42 = vmul.f32 %v1156_v34, %v2642_v1  ;;  %v1155_v46 = vadd.f32 %v1153_v31, %v1149_v15 }
 0x18e   : > { %v751_v36 = vpop.f32.mrf.mxu0  ;;  %v1262_v48 = vmul.f32 %v1156_v34, %v2614_v28  ;;  %v970_v49 = vmul.f32 %v931_v29, %v843_v35  ;;  %v1207_v52 = vadd.f32 %v1205_v41, %v1201_v21  ;;  %v1164_v33 = vmul.f32 %v2695_v19, %v1162_v40 }
 0x18f   : > { %v827_v22 = vmax.f32 %v809_v25, 0.0  ;;  %v785_v53 = vmul.f32 %v2587_v45, %v751_v36  ;;  %v1160_v55 = vadd.f32 %v1158_v39, %v1154_v16  ;;  %v844_v44 = vmin.f32 %v826_v50, 6.0  ;;  %v946_v36 = vpop.permute.xlu1 %945 }
 0x190   : > { %v1870_v12 = vpop.f32.mrf.mxu0  ;;  %988 = vst [vmem:[#allocation2 + $0x60] sm:$0xff] %v970_v49  ;;  %v1100_v58 = vadd.f32 %v2737_v5, %v1092_v37  ;;  %v1212_v62 = vadd.f32 %v1210_v42, %v1206_v30  ;;  %v1216_v63 = vmul.f32 %v1162_v40, %v2665_v32  ;;  %v1264_v3 = vadd.f32 %v1262_v48, %v1258_v61 }
 0x191   : > { %v845_v38 = vmin.f32 %v827_v22, 6.0  ;;  %v810_v0 = vadd.f32 %v2592_v47, %v785_v53  ;;  %v1268_v4 = vmul.f32 %v1162_v40, %v2633_v51  ;;  %v1222_v6 = vmul.f32 %v2671_v23, %v970_v49 }
 0x192   : > { %v756_v56 = vpop.f32.mrf.mxu0  ;;  %v971_v7 = vmul.f32 %v936_v60, %v844_v44  ;;  %v1157_v8 = vld [vmem:[#allocation2 + $0x51] sm:$0xff]  ;;  %v1101_v15 = vadd.f32 %v2737_v5, %v1093_v54  ;;  %v1166_v16 = vadd.f32 %v1164_v33, %v1160_v55  ;;  %v1274_v61 = vmul.f32 %v2639_v59, %v970_v49 }
 0x193   : > { %v1163_v9 = vld [vmem:[#allocation2 + $0x52] sm:$0xff]  ;;  %v972_v10 = vmul.f32 %v941_v2, %v845_v38  ;;  %v828_v11 = vmax.f32 %v810_v0, 0.0  ;;  %v786_v13 = vmul.f32 %v2587_v45, %v756_v56  ;;  %v1159_v17 = vmul.f32 %v1157_v8, %v2681_v57  ;;  %v951_v0 = vpop.permute.xlu0 %950 }
 0x194   : > { %v1873_v26 = vpop.f32.mrf.mxu0  ;;  %v1211_v18 = vmul.f32 %v1157_v8, %v2642_v1  ;;  %989 = vst [vmem:[#allocation2 + $0x68] sm:$0xff] %v971_v7  ;;  %v1218_v21 = vadd.f32 %v1216_v63, %v1212_v62  ;;  %v1165_v24 = vmul.f32 %v2695_v19, %v1163_v9  ;;  %v1263_v25 = vmul.f32 %v1157_v8, %v2614_v28 }
 0x195   : > { %990 = vst [vmem:[#allocation2 + $0x70] sm:$0xff] %v972_v10  ;;  %v1102_v27 = vmax.f32 %v1100_v58, 0.0  ;;  %v1161_v29 = vadd.f32 %v1159_v17, %v1155_v46  ;;  %v1217_v31 = vmul.f32 %v1163_v9, %v2665_v32  ;;  %v846_v34 = vmin.f32 %v828_v11, 6.0  ;;  %v956_v11 = vpop.permute.xlu1 %955 }
 0x196   : > { %v759_v20 = vpop.f32.mrf.mxu0  ;;  %v1213_v30 = vadd.f32 %v1211_v18, %v1207_v52  ;;  %v1270_v37 = vadd.f32 %v1268_v4, %v1264_v3  ;;  %v811_v39 = vadd.f32 %v2592_v47, %v786_v13  ;;  %v1103_v41 = vmax.f32 %v1101_v15, 0.0 }
 0x197   : > { %v787_v40 = vmul.f32 %v2587_v45, %v759_v20  ;;  %v1167_v42 = vadd.f32 %v1165_v24, %v1161_v29  ;;  %v1265_v49 = vadd.f32 %v1263_v25, %v1259_v43  ;;  %v973_v50 = vmul.f32 %v946_v36, %v846_v34 }
 0x198   : > { %v1874_v35 = vpop.f32.mrf.mxu0  ;;  %v1219_v48 = vadd.f32 %v1217_v31, %v1213_v30  ;;  %v829_v28 = vmax.f32 %v811_v39, 0.0  ;;  %v1104_v46 = vmin.f32 %v1102_v27, 6.0  ;;  %v1105_v52 = vmin.f32 %v1103_v41, 6.0 }
 0x199   : > { %v812_v12 = vadd.f32 %v2592_v47, %v787_v40  ;;  %v1269_v22 = vmul.f32 %v1163_v9, %v2633_v51  ;;  %v1224_v53 = vadd.f32 %v1222_v6, %v1218_v21  ;;  %v1223_v54 = vmul.f32 %v2671_v23, %v971_v7  ;;  %991 = vst [vmem:[#allocation2 + $0x78] sm:$0xff] %v973_v50 }
 0x19a   : > { %v1168_v55 = vmul.f32 %v2724_v14, %v1166_v16  ;;  %v847_v44 = vmin.f32 %v829_v28, 6.0  ;;  %v1774_v58 = vpack.c.bf16 %v1105_v52, %v1104_v46  ;;  %v1169_v43 = vmul.f32 %v2724_v14, %v1167_v42 }
 0x19b   : > { %v1226_v33 = vld [vmem:[#allocation2 + $0x61] sm:$0xff]  ;;  %v830_v56 = vmax.f32 %v812_v12, 0.0  ;;  %v1271_v60 = vadd.f32 %v1269_v22, %v1265_v49  ;;  %v1276_v62 = vadd.f32 %v1274_v61, %v1270_v37  ;;  %v1225_v2 = vadd.f32 %v1223_v54, %v1219_v48 }
 0x19c   : > { %v1232_v45 = vld [vmem:[#allocation2 + $0x62] sm:$0xff]  ;;  %v1228_v47 = vmul.f32 %v1226_v33, %v2681_v57  ;;  %v1280_v63 = vmul.f32 %v1226_v33, %v2642_v1  ;;  %v1233_v38 = vld [vmem:[#allocation2 + $0x6a] sm:$0xff]  ;;  %v1275_v4 = vmul.f32 %v2639_v59, %v971_v7  ;;  %1775 = vst [vmem:[#allocation3] sm:$0xff] %v1774_v58   ;;  %v974_v9 = vmul.f32 %v951_v0, %v847_v44 }
 0x19d   : > { %v1227_v51 = vld [vmem:[#allocation2 + $0x69] sm:$0xff]  ;;  %v1234_v3 = vmul.f32 %v2695_v19, %v1232_v45  ;;  %v848_v10 = vmin.f32 %v830_v56, 6.0  ;;  %v1235_v15 = vmul.f32 %v2695_v19, %v1233_v38  ;;  %v1170_v16 = vadd.f32 %v2737_v5, %v1168_v55 }
 0x19e   : > { %v1229_v6 = vmul.f32 %v1227_v51, %v2681_v57  ;;  %v1230_v26 = vadd.f32 %v1228_v47, %v1224_v53  ;;  %v1281_v8 = vmul.f32 %v1227_v51, %v2642_v1  ;;  %v1171_v17 = vadd.f32 %v2737_v5, %v1169_v43  ;;  %992 = vst [vmem:[#allocation2 + $0x80] sm:$0xff] %v974_v9 }
 0x19f   : > { %v1277_v61 = vadd.f32 %v1275_v4, %v1271_v60  ;;  %v1282_v20 = vadd.f32 %v1280_v63, %v1276_v62  ;;  %v975_v59 = vmul.f32 %v956_v11, %v848_v10  ;;  %v1172_v21 = vmax.f32 %v1170_v16, 0.0 }
 0x1a0   : > { %v1231_v13 = vadd.f32 %v1229_v6, %v1225_v2  ;;  %v1236_v18 = vadd.f32 %v1234_v3, %v1230_v26  ;;  %v1173_v24 = vmax.f32 %v1171_v17, 0.0  ;;  %v1286_v1 = vmul.f32 %v1232_v45, %v2665_v32 }
 0x1a1   : > { %v1283_v25 = vadd.f32 %v1281_v8, %v1277_v61  ;;  %993 = vst [vmem:[#allocation2 + $0x88] sm:$0xff] %v975_v59  ;;  %v1174_v29 = vmin.f32 %v1172_v21, 6.0  ;;  %v1287_v35 = vmul.f32 %v1233_v38, %v2665_v32  ;;  %v1292_v42 = vmul.f32 %v2671_v23, %v973_v50 }
 0x1a2   : > { %v1237_v7 = vadd.f32 %v1235_v15, %v1231_v13  ;;  %v1238_v27 = vmul.f32 %v2724_v14, %v1236_v18  ;;  %v1175_v30 = vmin.f32 %v1173_v24, 6.0  ;;  %v1288_v34 = vadd.f32 %v1286_v1, %v1282_v20  ;;  %v1517_v15 = vld [vmem:[%s2512_s21] sm:$0xff]  ;;  %v1520_v20 = vld [vmem:[%s2512_s21 + $0x18] sm:$0xff]  ;;  %v1518_v1 = vld [vmem:[%s2512_s21 + $0x8] sm:$0xff] }
 0x1a3   : > { %v2043_v36 = vld [vmem:[#allocation3] sm:$0xff]   ;;  %v1289_v41 = vadd.f32 %v1287_v35, %v1283_v25  ;;  %v1293_v52 = vmul.f32 %v2671_v23, %v974_v9 }
 0x1a4   : > { %v1239_v31 = vmul.f32 %v2724_v14, %v1237_v7  ;;  %v1240_v37 = vadd.f32 %v2737_v5, %v1238_v27  ;;  %v1779_v39 = vpack.c.bf16 %v1175_v30, %v1174_v29  ;;  %1891 = vmatprep.mubr.bf16.mxu1 %v2043_v36  ;;  %v1294_v46 = vadd.f32 %v1292_v42, %v1288_v34  ;;  %v1519_v9 = vld [vmem:[%s2512_s21 + $0x10] sm:$0xff] }
 0x1a5   : > { %v1296_v49 = vld [vmem:[#allocation2 + $0x79] sm:$0xff]  ;;  %v1295_v33 = vadd.f32 %v1293_v52, %v1289_v41  ;;  %v1523_v34 = vld [vmem:[%s2512_s21 + $0x30] sm:$0xff] }
 0x1a6   : > { %v1241_v40 = vadd.f32 %v2737_v5, %v1239_v31  ;;  %v1242_v48 = vmax.f32 %v1240_v37, 0.0  ;;  %v1302_v28 = vld [vmem:[#allocation2 + $0x7a] sm:$0xff]  ;;  %1791 = vst [vmem:[#allocation3 + $0x8] sm:$0xff] %v1779_v39   ;;  %v1298_v32 = vmul.f32 %v1296_v49, %v2681_v57 }
 0x1a7   : > { %v1304_v44 = vmul.f32 %v2695_v19, %v1302_v28  ;;  %v1521_v39 = vld [vmem:[%s2512_s21 + $0x20] sm:$0xff]  ;;  %v1524_v49 = vld [vmem:[%s2512_s21 + $0x38] sm:$0xff] }
 0x1a8   : > { %v1243_v12 = vmax.f32 %v1241_v40, 0.0  ;;  %v1297_v22 = vld [vmem:[#allocation2 + $0x81] sm:$0xff]  ;;  %v1244_v54 = vmin.f32 %v1242_v48, 6.0  ;;  %v1300_v45 = vadd.f32 %v1298_v32, %v1294_v46 }
 0x1a9   : > { %v1303_v53 = vld [vmem:[#allocation2 + $0x82] sm:$0xff]  ;;  %v1299_v50 = vmul.f32 %v1297_v22, %v2681_v57 }
 0x1aa   : > { %v1245_v55 = vmin.f32 %v1243_v12, 6.0  ;;  %v1306_v58 = vadd.f32 %v1304_v44, %v1300_v45  ;;  %v1305_v60 = vmul.f32 %v2695_v19, %v1303_v53  ;;  %v1522_v32 = vld [vmem:[%s2512_s21 + $0x28] sm:$0xff]  ;;  %s2272_s21 = smov [#allocation12]  }
 0x1ab   : > { %v1301_v43 = vadd.f32 %v1299_v50, %v1295_v33  ;;  %s2159_s18 = sshll.u32 %s2272_s21, 4  ;;  %s2160_s18 = int_to_ptr.vmem [resolvable:$false] %s2159_s18 }
 0x1ac   : > { %v1784_v56 = vpack.c.bf16 %v1245_v55, %v1244_v54  ;;  %v1308_v47 = vmul.f32 %v2724_v14, %v1306_v58  ;;  %s2161_s12 = scalar_lea.vmem %s2160_s18, 2048  ;;  %p2162_p2 = scmp.lt.s32.totalorder %s2815_s25, %s2160_s18 }
 0x1ad   : > { %v1307_v62 = vadd.f32 %v1305_v60, %v1301_v43  ;;  %v2046_v23 = vld [vmem:[#allocation3 + $0x8] sm:$0xff]   ;;  %p2163_p0 = scmp.lt.s32.totalorder %s2161_s12, %s2155_s14 }
 0x1ae   : > { %1792 = vst [vmem:[#allocation3 + $0x10] sm:$0xff] %v1784_v56   ;;  %1892 = vmatmul.mubr.bf16.vlgmr.msra.gmra.mxu1 %v2046_v23  ;;  %v1310_v51 = vadd.f32 %v2737_v5, %v1308_v47 }
 0x1af   : > { %v1309_v63 = vmul.f32 %v2724_v14, %v1307_v62  ;;  %v1755_v14 = vld [vmem:[%s2928_s2] ss:$0 sm:$0xff]  ;;  %p2164_p3 = por %p2163_p0, %p2162_p2 }
 0x1b0   : > { %v1312_v0 = vmax.f32 %v1310_v51, 0.0 }
 0x1b1   : > { %v1311_v38 = vadd.f32 %v2737_v5, %v1309_v63  ;;  %v1756_v5 = vld [vmem:[%s2929_s7] ss:$0 sm:$0xff]  ;;  %p2165_p11 = pnand %p2164_p3, %p2158_p13 }
 0x1b2   : > { %v1314_v3 = vmin.f32 %v1312_v0, 6.0 }
 0x1b3   : > { %v1313_v2 = vmax.f32 %v1311_v38, 0.0 }
 0x1b5   : > { %v2047_v57 = vld [vmem:[#allocation3 + $0x10] sm:$0xff]   ;;  %v1315_v19 = vmin.f32 %v1313_v2, 6.0 }
 0x1b6   : > { %1895 = vmatprep.mubr.bf16.mxu1 %v2047_v57 }
 0x1b7   : > { %v1789_v4 = vpack.c.bf16 %v1315_v19, %v1314_v3 }
 0x1b9   : > { %1793 = vst [vmem:[#allocation3 + $0x18] sm:$0xff] %v1789_v4  }
 0x1c0   : > { %v2048_v6 = vld [vmem:[#allocation3 + $0x18] sm:$0xff]  }
 0x1c1   : > { %1896 = vmatmul.mubr.bf16.gmra.mxu1 %v2048_v6 }
 0x26e   : > { %v1893_v26 = vpop.f32.mrf.mxu1 }
 0x26f   : > { %v1496_v8 = vmul.f32 %v1893_v26, %v1755_v14 }
 0x270   : > { %v1456_v10 = vpop.f32.mrf.mxu1 }
 0x271   : > { %v1511_v11 = vadd.f32 %v1756_v5, %v1496_v8  ;;  %v1494_v13 = vmul.f32 %v1755_v14, %v1456_v10 }
 0x272   : > { %v1894_v16 = vpop.f32.mrf.mxu1 }
 0x273   : > { %v1527_v17 = vadd.f32 %v1519_v9, %v1511_v11  ;;  %v1509_v18 = vadd.f32 %v1756_v5, %v1494_v13  ;;  %v1497_v61 = vmul.f32 %v1894_v16, %v1755_v14 }
 0x274   : > { %v1459_v59 = vpop.f32.mrf.mxu1 }
 0x275   : > { %1535 = vst [vmem:[%s2799_s4 + $0x10] sm:$0xff] %v1527_v17  ;;  %v1525_v7 = vadd.f32 %v1517_v15, %v1509_v18  ;;  %v1512_v21 = vadd.f32 %v1756_v5, %v1497_v61  ;;  %v1495_v24 = vmul.f32 %v1755_v14, %v1459_v59 }
 0x277   : > { %1533 = vst [vmem:[%s2799_s4] sm:$0xff] %v1525_v7  ;;  %v1528_v25 = vadd.f32 %v1520_v20, %v1512_v21  ;;  %v1510_v27 = vadd.f32 %v1756_v5, %v1495_v24 }
 0x279   : > { %1536 = vst [vmem:[%s2799_s4 + $0x18] sm:$0xff] %v1528_v25  ;;  %v1526_v29 = vadd.f32 %v1518_v1, %v1510_v27 }
 0x27b   : > { %1534 = vst [vmem:[%s2799_s4 + $0x8] sm:$0xff] %v1526_v29 }
 0x281   : > { %v1897_v30 = vpop.f32.mrf.mxu1 }
 0x282   : > { %v1500_v31 = vmul.f32 %v1897_v30, %v1755_v14 }
 0x283   : > { %v1472_v35 = vpop.f32.mrf.mxu1 }
 0x284   : > { %v1515_v36 = vadd.f32 %v1756_v5, %v1500_v31  ;;  %v1498_v37 = vmul.f32 %v1755_v14, %v1472_v35 }
 0x285   : > { %v1898_v40 = vpop.f32.mrf.mxu1 }
 0x286   : > { %v1531_v41 = vadd.f32 %v1523_v34, %v1515_v36  ;;  %v1513_v42 = vadd.f32 %v1756_v5, %v1498_v37  ;;  %v1501_v48 = vmul.f32 %v1898_v40, %v1755_v14 }
 0x287   : > { %v1475_v28 = vpop.f32.mrf.mxu1 }
 0x288   : > { %1539 = vst [vmem:[%s2799_s4 + $0x30] sm:$0xff] %v1531_v41  ;;  %v1529_v12 = vadd.f32 %v1521_v39, %v1513_v42  ;;  %v1516_v46 = vadd.f32 %v1756_v5, %v1501_v48  ;;  %v1499_v52 = vmul.f32 %v1755_v14, %v1475_v28 }
 0x28a   : > { %1537 = vst [vmem:[%s2799_s4 + $0x20] sm:$0xff] %v1529_v12  ;;  %v1532_v22 = vadd.f32 %v1524_v49, %v1516_v46  ;;  %v1514_v53 = vadd.f32 %v1756_v5, %v1499_v52 }
 0x28c   : > { %1540 = vst [vmem:[%s2799_s4 + $0x38] sm:$0xff] %v1532_v22  ;;  %v1530_v54 = vadd.f32 %v1522_v32, %v1514_v53 }
 0x28e   : > { %1538 = vst [vmem:[%s2799_s4 + $0x28] sm:$0xff] %v1530_v54 }
 0x28f   : > { %2168 = shalt.err (!%p2165_p11)
}
 0x290   : > { %s2169_s2 = scalar_lea.hbm %s2821_s19, 1024  ;;  %s2173_s7 = scalar_lea.hbm %s2931_s15, 8192 }
 0x291   : > { %p2170_p5 = scmp.ne.s32.totalorder %s2821_s19, %s2169_s2  ;;  %p2174_p10 = scmp.lt.s32.totalorder %s2821_s19, %s2931_s15 }
 0x292   : > { %p2175_p12 = scmp.lt.s32.totalorder %s2173_s7, %s2169_s2 }
 0x293   : > { %p2171_p7 = pnand %p2170_p5, %p2458_p6 }
 0x294   : > { %p2176_p1 = por %p2175_p12, %p2174_p10 }
 0x295   : > { %p2172_p9 = pneg %p2171_p7 }
 0x297   : > { %p2177_p4 = pnand %p2176_p1, %p2172_p9 }
 0x299   : > { %2180 = shalt.err (!%p2177_p4)
}
 0x29a   : > { %s2273_s26 = smov 128   ;;  %s2274_s17 = smov 8  }
 0x29b   : > { %1914 = dma.vmem_to_hbm [thread:$0]  (%p2458_p6), %s2815_s25, 1024, %s2821_s19, %s1542_s9, %s2273_s26, %s2273_s26, %s2274_s17  }
 0x29c PF: > { %s2932_s13 = sld [smem:[#allocation17_spill]]  ;;  %p1941_p8 = scmp.ge.s32.totalorder %s2259_s28, 2 }
 0x29d   : > { %s2933_s29 = sld [smem:[#allocation19_spill]] }
 0x2a2   : > { %s1572_s16 = sand.u32 1, %s2932_s13  }
 0x2a3   : > { %p2934_p13 = scmp.ne.s32.totalorder %s2933_s29, 0  ;;  %s1573_s14 = scalar_lea.sflag [#allocation6], %s1572_s16 }
 0x2a5   : > { %p1931_p2 = pnand %p1941_p8, %p2934_p13 }
 0x2a7   : > { %p1932_p0 = pneg %p1931_p2 }
 0x2a9   : > { %2226 = dma.done.wait (%p1932_p0), %s1573_s14, 1024  }
 0x2aa   : > { %2228 = vsyncadd (%p1932_p0), %s1573_s14, 4294966272  ;;  %s30_s28 = sadd.s32 1, %s2259_s28   ;;  %s2935_s24 = sld [smem:[#allocation18_spill]] }
 0x2ab   : > { %p27_p3 = scmp.ge.s32.totalorder %s30_s28, 10   ;;  %s2936_s26 = sld [smem:[#allocation20_spill]] }
 0x2ac   : > { %s2937_s21 = smov %s2235_s22  ;;  %s2938_s22 = smov %s2239_s23 }
 0x2ad   : > { %s2939_s23 = smov %s2475_s8  ;;  %s2940_s25 = smov %s2255_s27 }
 0x2ae   : > { %s2941_s27 = smov %s2947_s20  ;;  %29 = sbr.rel (!%p27_p3) target bundleno = 19 (0x13), region = 131 }
 0x2b3   :  { %1578 = vsyncpa [#allocation5], 1 }
 0x2b4   :  { %1580 = vsyncpa [#allocation5 + $0x1], 1 }
 0x2b5   :  { %1581 = vsyncpa [#allocation8], 1 }
 0x2b6   :  { %1582 = vsyncpa [#allocation11], 1 }
 0x2b7   :  { %1584 = vsyncpa [#allocation11 + $0x1], 1 }
 0x2b8   :  { %1585 = vsyncpa [#allocation6], 1 }
 0x2b9   :  { %1587 = vsyncpa [#allocation6 + $0x1], 1 }

</bundles_post_ra>
